<compile_context>
chip_gen: v7x
topology: tpu7x:2x2x1
jax: 0.10.0
libtpu: 0.0.40
codegen_flags: <defaults>
</compile_context>

<pallas_src>
import functools
from typing import NamedTuple

import jax
import jax.numpy as jnp
from jax.experimental import pallas as pl
from jax.experimental.pallas import tpu as pltpu


# ----------------------------------------------------------------------------
# VGG19 "features" layer plan up to index 29 (torchvision layout):
#   convs at 0,2 | pool 4 | convs 5,7 | pool 9 | convs 10,12,14,16 | pool 18 |
#   convs 19,21,23,25 | pool 27 | conv 28   (ReLU always follows each conv)
# ----------------------------------------------------------------------------
VGG_CFG = (
    ("conv", 3, 64, 0),
    ("conv", 64, 64, 2),
    ("pool", 4),
    ("conv", 64, 128, 5),
    ("conv", 128, 128, 7),
    ("pool", 9),
    ("conv", 128, 256, 10),
    ("conv", 256, 256, 12),
    ("conv", 256, 256, 14),
    ("conv", 256, 256, 16),
    ("pool", 18),
    ("conv", 256, 512, 19),
    ("conv", 512, 512, 21),
    ("conv", 512, 512, 23),
    ("conv", 512, 512, 25),
    ("pool", 27),
    ("conv", 512, 512, 28),
)


def _round_up(x, m):
    return ((x + m - 1) // m) * m


def _cdiv(a, b):
    return -(-a // b)


@functools.lru_cache(maxsize=1)
def _tpu_vmem_capacity_bytes():
    try:
        return int(pltpu.get_tpu_info().vmem_capacity_bytes)
    except Exception:
        return 64 * 1024 * 1024  # conservative: assume v7x (64 MiB physical)


def _vmem_limit_bytes():
    # Leave headroom below physical VMEM on every generation (v7x: 48 MiB, v5e/v6e: 96 MiB).
    return min((_tpu_vmem_capacity_bytes() * 3) // 4, 96 * 1024 * 1024)


# -------------------------- flattened padded layout ---------------------------
# "Format F" for an HxW activation with a row width Wp = W + 2:
#   buffer (N, P, C), P = (n_row + 2) * tm, head = tm - Wp - 1.
#   Padded pixel (yp, xc) lives at buffer row  head + yp*Wp + xc ; all rows outside the
#   real HxW interior are exact zeros, so the buffer IS the next conv's padded input.
class _Fmt(NamedTuple):
    buf: jax.Array  # (N, P, C) bf16
    head: int
    H: int
    W: int


def _row_plan(H, W):
    """Balanced row tiling shared by every conv at this resolution."""
    Wp = W + 2
    Mreal = H * Wp
    tm_cap = 512                                   # keep f32 partials small on v5e/v6e
    n_row = max(1, _cdiv(Mreal, tm_cap))
    tm = _round_up(_cdiv(Mreal, n_row), 8)         # balanced -> <2% junk rows
    tm = max(tm, _round_up(Wp + 9, 8))             # needed so one tail tile covers reads
    n_row = max(1, _cdiv(Mreal, tm))
    return Wp, Mreal, tm, n_row


# ----------------------------- Pallas kernels --------------------------------
def _conv_tap_kernel(x_ref, w_ref, b_ref, m_ref, o_ref, acc_ref, *, taps, tm, n_img):
    """Fused conv (sum of tap matmuls) + bias + ReLU, written in format-F layout.

    x_ref : (Pin, K)  bf16  whole flattened image, resident per batch item
    w_ref : (ntaps, K, tcout) bf16 ; b_ref: (1, tcout) f32 ; m_ref: (tm, 1) f32
    o_ref : (tm, tcout) bf16 ; acc_ref: (tm, tcout) f32 VMEM scratch
    Grid axis 2 has n_img + 2 steps: step 0 / step n_img+1 write the head/tail zero tiles.
    """
    j = pl.program_id(2)
    is_img = jnp.logical_and(j >= 1, j <= n_img)

    @pl.when(is_img)
    def _():
        base = (j - 1) * tm                       # tm is a multiple of 8 -> aligned
        for t, s in enumerate(taps):              # static unroll over the taps
            s_al = (s // 8) * 8
            s_off = s - s_al
            start = pl.multiple_of(base + s_al, 8)
            win = x_ref[pl.ds(start, tm + 8), :]  # aligned dynamic sublane slice
            lhs = win[s_off:s_off + tm, :]        # static sub-slice -> tap rows
            part = jnp.dot(lhs, w_ref[t], preferred_element_type=jnp.float32)
            if t == 0:
                acc_ref[...] = part
            else:
                acc_ref[...] += part
        out = jnp.maximum(acc_ref[...] + b_ref[...], 0.0) * m_ref[...]
        o_ref[...] = out.astype(o_ref.dtype)

    @pl.when(jnp.logical_not(is_img))
    def _():
        o_ref[...] = jnp.zeros(o_ref.shape, o_ref.dtype)


def _maxpool2x2_kernel(x_ref, o_ref, *, C):
    """MaxPool2d(2,2) on a lane-dense tile.

    x_ref: (2*th, Wo, 2*C) -- column pairs folded into the lane dim
    o_ref: (th, Wo, C)
    """
    x = x_ref[...]
    th2, wo, c2 = x.shape
    x = x.reshape(th2 // 2, 2, wo, c2)            # split leading dim only (cheap)
    r = jnp.max(x, axis=1)                        # row-pair max -> (th, Wo, 2C)
    o_ref[...] = jnp.maximum(r[..., :C], r[..., C:]).astype(o_ref.dtype)


# ------------------------------ conv wrappers ---------------------------------
def _conv_core(xbuf, taps, H, W, wmat, bvec):
    """Shared pallas_call builder.  Returns (format-F buffer, head)."""
    N, Pin, K = xbuf.shape
    ntaps, K2, Cout = wmat.shape
    assert K2 == K and ntaps == len(taps)
    Wp, Mreal, tm, n_row = _row_plan(H, W)

    # Pallas does no runtime VMEM bounds check: guard the in-kernel window reads.
    max_read = (n_row - 1) * tm + (max(taps) // 8) * 8 + tm + 8
    assert Pin >= max_read, f"input buffer too short: {Pin} < {max_read}"

    head_out = tm - Wp - 1
    assert head_out >= 0
    P_out = (n_row + 2) * tm

    tcout = min(256, Cout)
    if n_row == 1 and Cout >= 256:
        tcout = 128                               # v7x: keep both TensorCores busy late
    if Cout % tcout:
        tcout = Cout
    n_cout = Cout // tcout

    # Per-output-row validity mask: zeros the junk columns and out-of-image rows so the
    # written buffer doubles as the next conv's zero-padded input.
    i = jnp.arange(n_row * tm, dtype=jnp.int32)
    valid = jnp.logical_and(i < Mreal, (i % Wp) < W)
    mask = jnp.concatenate([
        jnp.zeros((tm,), jnp.float32),
        valid.astype(jnp.float32),
        jnp.zeros((tm,), jnp.float32),
    ]).reshape(P_out, 1)

    bmat = bvec.reshape(1, Cout).astype(jnp.float32)
    xbuf = xbuf.astype(jnp.bfloat16)
    wmat = wmat.astype(jnp.bfloat16)

    kernel = functools.partial(_conv_tap_kernel, taps=tuple(taps), tm=tm, n_img=n_row)
    out = pl.pallas_call(
        kernel,
        out_shape=jax.ShapeDtypeStruct((N, P_out, Cout), jnp.bfloat16),
        grid=(N, n_cout, n_row + 2),              # rows innermost: weights stay resident
        in_specs=[
            pl.BlockSpec((None, Pin, K), lambda n, c, j: (n, 0, 0)),
            pl.BlockSpec((ntaps, K, tcout), lambda n, c, j: (0, 0, c)),
            pl.BlockSpec((1, tcout), lambda n, c, j: (0, c)),
            pl.BlockSpec((tm, 1), lambda n, c, j: (j, 0)),
        ],
        out_specs=pl.BlockSpec((None, tm, tcout), lambda n, c, j: (n, j, c)),
        scratch_shapes=[pltpu.VMEM((tm, tcout), jnp.float32)],
        compiler_params=pltpu.CompilerParams(
            dimension_semantics=("parallel", "parallel", "parallel"),
            vmem_limit_bytes=_vmem_limit_bytes(),
        ),
    )(xbuf, wmat, bmat, mask)
    return out, head_out


def _conv_from_fmt(fmt, w, b):
    """Conv3x3+ReLU consuming a format-F buffer directly (no unpad/re-pad)."""
    H, W = fmt.H, fmt.W
    Wp, _, tm, _ = _row_plan(H, W)
    assert fmt.head == tm - Wp - 1
    Cin = fmt.buf.shape[-1]
    taps = tuple(fmt.head + dy * Wp + dx for dy in range(3) for dx in range(3))
    wmat = w.reshape(9, Cin, -1)
    out, head = _conv_core(fmt.buf, taps, H, W, wmat, b)
    return _Fmt(out, head, H, W)


def _conv_from_nhwc(x_nhwc, w, b):
    """First conv of a block: one pad+flatten of the (post-pool) NHWC activation."""
    N, H, W, Cin = x_nhwc.shape
    Wp, Mreal, tm, n_row = _row_plan(H, W)
    need = n_row * tm + 2 * Wp + 16
    have = (H + 2) * Wp
    pad_rows = max(0, _cdiv(need - have, Wp)) if need > have else 0
    xp = jnp.pad(x_nhwc.astype(jnp.bfloat16), ((0, 0), (1, 1 + pad_rows), (1, 1), (0, 0)))
    xbuf = xp.reshape(N, (H + 2 + pad_rows) * Wp, Cin)
    taps = tuple(dy * Wp + dx for dy in range(3) for dx in range(3))
    wmat = w.reshape(9, Cin, -1)
    out, head = _conv_core(xbuf, taps, H, W, wmat, b)
    return _Fmt(out, head, H, W)


def _conv_from_nhwc_small_cin(x_nhwc, w, b):
    """conv1_1 (Cin=3): wrapper-side im2col -> single K = 9*Cin matmul per tile."""
    N, H, W, Cin = x_nhwc.shape
    Wp, Mreal, tm, n_row = _row_plan(H, W)
    Cout = w.shape[-1]
    xp = jnp.pad(x_nhwc.astype(jnp.bfloat16), ((0, 0), (1, 2), (1, 1), (0, 0)))
    xf = xp.reshape(N, (H + 3) * Wp, Cin)
    taps9 = [dy * Wp + dx for dy in range(3) for dx in range(3)]
    patches = jnp.concatenate([xf[:, s:s + Mreal, :] for s in taps9], axis=-1)
    need = n_row * tm + 16
    patches = jnp.pad(patches, ((0, 0), (0, need - Mreal), (0, 0)))
    wmat = w.reshape(1, 9 * Cin, Cout)
    out, head = _conv_core(patches, (0,), H, W, wmat, b)
    return _Fmt(out, head, H, W)


def _fmt_to_nhwc(fmt):
    """Extract the real HxW interior of a format-F buffer (only at block boundaries /
    for returned features)."""
    N, _, C = fmt.buf.shape
    H, W = fmt.H, fmt.W
    Wp = W + 2
    start = fmt.head + Wp + 1
    img = fmt.buf[:, start:start + H * Wp, :]
    return img.reshape(N, H, Wp, C)[:, :, :W, :]


def conv3x3_relu(x_nhwc, w, b):
    """Standalone Conv2d(k=3, stride=1, pad=1) + ReLU: NHWC in -> NHWC bf16 out."""
    cin = x_nhwc.shape[-1]
    fmt = _conv_from_nhwc_small_cin(x_nhwc, w, b) if cin < 8 else _conv_from_nhwc(x_nhwc, w, b)
    return _fmt_to_nhwc(fmt)


def maxpool2x2(x, *, block_budget_bytes=8 * 1024 * 1024):
    """MaxPool2d(kernel=2, stride=2).  x: (N, H, W, C), any dtype."""
    N, H, W, C = x.shape
    Ho, Wo = H // 2, W // 2
    x = x[:, :2 * Ho, :2 * Wo, :]                 # floor behavior (no-op for even H, W)
    # Fold column pairs into the lane dim: pure row-major reinterpretation.
    x2 = x.reshape(N, 2 * Ho, Wo, 2 * C)

    bytes_per_row_pair = max(1, 2 * Wo * 2 * C * x.dtype.itemsize)
    cap = max(1, block_budget_bytes // bytes_per_row_pair)
    th = 1
    for d in range(1, Ho + 1):
        if Ho % d == 0 and d <= cap:
            th = d

    kernel = functools.partial(_maxpool2x2_kernel, C=C)
    return pl.pallas_call(
        kernel,
        out_shape=jax.ShapeDtypeStruct((N, Ho, Wo, C), x.dtype),
        grid=(N, Ho // th),
        in_specs=[pl.BlockSpec((None, 2 * th, Wo, 2 * C), lambda n, r: (n, r, 0, 0))],
        out_specs=pl.BlockSpec((None, th, Wo, C), lambda n, r: (n, r, 0, 0)),
        compiler_params=pltpu.CompilerParams(
            dimension_semantics=("parallel", "parallel"),
            vmem_limit_bytes=_vmem_limit_bytes(),
        ),
    )(x2)


# ---------------------------- parameters & forward ----------------------------
def init_vgg19_params(key):
    """Deterministic synthetic weights (He-style init); shapes match vgg19.features convs."""
    params = {}
    for entry in VGG_CFG:
        if entry[0] != "conv":
            continue
        _, cin, cout, idx = entry
        key, wk, bk = jax.random.split(key, 3)
        scale = (2.0 / (9 * cin)) ** 0.5
        w = scale * jax.random.normal(wk, (3, 3, cin, cout), jnp.float32)
        b = 0.01 * jax.random.normal(bk, (cout,), jnp.float32)
        params[idx] = (w, b)
    return params


@functools.partial(jax.jit, static_argnames=("layers", "std", "normalize", "weight_factor"))
def vgg19_features(x_nchw, params, layers=(1, 6, 11, 20, 29), std=False,
                   normalize=False, weight_factor=1):
    """Mirrors VGG19FeatureExtractor.forward (default args): (content, style_list), NCHW f32."""
    layer_set = set(layers)
    final_ix = max(layers)

    supported = set()
    for e in VGG_CFG:
        supported.add(e[3] + 1 if e[0] == "conv" else e[1])
    bad = layer_set - supported
    if bad:
        # TODO(synk): pre-ReLU conv indices unsupported because ReLU is fused into the kernel.
        raise ValueError(f"unsupported layer indices {sorted(bad)}; "
                         f"supported (post-ReLU conv / pool outputs): {sorted(supported)}")

    x = x_nchw.astype(jnp.float32)
    if std:
        mean = jnp.array([0.485, 0.456, 0.406], jnp.float32).reshape(1, 3, 1, 1)
        sd = jnp.array([0.229, 0.224, 0.225], jnp.float32).reshape(1, 3, 1, 1)
        x = (x - mean) / sd

    x = jnp.transpose(x, (0, 2, 3, 1))  # NCHW -> NHWC once; trunk runs bf16

    cur_nhwc = x
    cur_fmt = None
    style_nhwc = []
    content_nhwc = None

    def as_nhwc():
        return _fmt_to_nhwc(cur_fmt) if cur_fmt is not None else cur_nhwc

    for entry in VGG_CFG:
        if entry[0] == "conv":
            _, cin, cout, idx = entry
            w, b = params[idx]
            if cur_fmt is not None:
                cur_fmt = _conv_from_fmt(cur_fmt, w, b)      # chained: no unpad/re-pad
            elif cin <= 8:
                cur_fmt = _conv_from_nhwc_small_cin(cur_nhwc, w, b)
            else:
                cur_fmt = _conv_from_nhwc(cur_nhwc, w, b)
            cur_nhwc = None
            out_idx = idx + 1  # fused conv+ReLU -> post-ReLU layer index
        else:
            _, out_idx = entry
            if cur_fmt is not None:
                cur_nhwc = _fmt_to_nhwc(cur_fmt)
                cur_fmt = None
            cur_nhwc = maxpool2x2(cur_nhwc)

        feat = None
        if out_idx in layer_set:
            feat = as_nhwc()
            style_nhwc.append(feat)
        if out_idx == 22:
            content_nhwc = feat if feat is not None else as_nhwc()
        if out_idx >= final_ix:
            break

    def to_nchw(f):
        return jnp.transpose(f.astype(jnp.float32), (0, 3, 1, 2))

    style_features = [to_nchw(f) for f in style_nhwc]
    content_features = to_nchw(content_nhwc) if content_nhwc is not None else None
    if normalize:
        style_features = [f / (f.shape[1] ** weight_factor) for f in style_features]
    # TODO(synk): hypercolumn branch (bilinear F.interpolate, align_corners=True) not implemented.
    return content_features, style_features


# ----------------------------------- main -------------------------------------
if __name__ == "__main__":
    key = jax.random.PRNGKey(0)
    pkey, xkey = jax.random.split(key)
    params = init_vgg19_params(pkey)

    def ref_conv(x, w, b):
        y = jax.lax.conv_general_dilated(
            x.astype(jnp.bfloat16).astype(jnp.float32),
            w.astype(jnp.bfloat16).astype(jnp.float32),
            (1, 1), "SAME", dimension_numbers=("NHWC", "HWIO", "NHWC"))
        return jnp.maximum(y + b, 0.0)

    ck = jax.random.PRNGKey(0)
    k1, k2, k3, k4, k5 = jax.random.split(ck, 5)

    # Numerical self-check: resident-image tap path (Cin=64).
    xt = jax.random.normal(k1, (1, 8, 8, 64), jnp.float32)
    wt = 0.1 * jax.random.normal(k2, (3, 3, 64, 64), jnp.float32)
    bt = 0.1 * jax.random.normal(k3, (64,), jnp.float32)
    got = conv3x3_relu(xt, wt, bt).astype(jnp.float32)
    err = float(jnp.max(jnp.abs(got - ref_conv(xt, wt, bt))))
    assert err < 5e-2, f"conv (Cin=64) mismatch: {err}"

    # Numerical self-check: im2col path (Cin=3, conv1_1 special case).
    x3 = jax.random.normal(k4, (1, 8, 8, 3), jnp.float32)
    w3 = 0.1 * jax.random.normal(k5, (3, 3, 3, 64), jnp.float32)
    got3 = conv3x3_relu(x3, w3, bt).astype(jnp.float32)
    err3 = float(jnp.max(jnp.abs(got3 - ref_conv(x3, w3, bt))))
    assert err3 < 5e-2, f"conv (Cin=3) mismatch: {err3}"

    # Chained convs: validates the format-F output (zero pad ring, masked junk columns,
    # head/tail tiles) really is a correct padded input for the next conv.
    fmt1 = _conv_from_nhwc(xt, wt, bt)
    fmt2 = _conv_from_fmt(fmt1, wt, bt)
    got_chain = _fmt_to_nhwc(fmt2).astype(jnp.float32)
    r1 = ref_conv(xt, wt, bt).astype(jnp.bfloat16).astype(jnp.float32)
    ref_chain = ref_conv(r1, wt, bt)
    errc = float(jnp.max(jnp.abs(got_chain - ref_chain)))
    assert errc < 1e-1, f"chained conv mismatch: {errc}"

    got_mp = maxpool2x2(xt.astype(jnp.bfloat16)).astype(jnp.float32)
    ref_mp = xt.astype(jnp.bfloat16).astype(jnp.float32).reshape(1, 4, 2, 4, 2, 64).max(axis=(2, 4))
    assert float(jnp.max(jnp.abs(got_mp - ref_mp))) < 1e-5, "maxpool kernel mismatch"

    # Small input consistent with the module: NCHW, 3 channels (first conv is 3->64).
    x = jax.random.normal(xkey, (2, 3, 32, 32), dtype=jnp.float32)
    content, styles = vgg19_features(x, params)

    jax.block_until_ready(content)
    for f in styles:
        jax.block_until_ready(f)

    assert content.shape == (2, 512, 4, 4)
    expected = [(2, 64, 32, 32), (2, 128, 16, 16), (2, 256, 8, 8),
                (2, 512, 4, 4), (2, 512, 2, 2)]
    assert [tuple(f.shape) for f in styles] == expected
    assert all(bool(jnp.isfinite(f).all()) for f in styles)
    assert bool(jnp.isfinite(content).all())

    print("KERNEL_OK")
</pallas_src>

<mosaic_0001>
module attributes {stable_mosaic.version = 11 : i64} {
  func.func @_conv_tap_kernel(%arg0: i32, %arg1: i32, %arg2: i32, %arg3: memref<1x120x64xbf16, #tpu.memory_space<vmem>>, %arg4: memref<9x64x64xbf16, #tpu.memory_space<vmem>>, %arg5: memref<1x64xf32, #tpu.memory_space<vmem>>, %arg6: memref<80x1xf32, #tpu.memory_space<vmem>>, %arg7: memref<1x80x64xbf16, #tpu.memory_space<vmem>>, %arg8: memref<80x64xf32, #tpu.memory_space<vmem>>) attributes {dimension_semantics = [#tpu.dimension_semantics<parallel>, #tpu.dimension_semantics<parallel>, #tpu.dimension_semantics<parallel>], iteration_bounds = array<i64: 1, 1, 3>, scalar_prefetch = 0 : i64, scratch_operands = 1 : i64, tpu.core_type = #tpu.core_type<tc>, window_params = [{transform_indices = @transform_0, window_bounds = array<i64: 1, 120, 64>}, {transform_indices = @transform_1, window_bounds = array<i64: 9, 64, 64>}, {transform_indices = @transform_2, window_bounds = array<i64: 1, 64>}, {transform_indices = @transform_3, window_bounds = array<i64: 80, 1>}, {transform_indices = @transform_4, window_bounds = array<i64: 1, 80, 64>}]} {
    %c1_i32 = arith.constant 1 : i32
    %0 = arith.cmpi sge, %arg2, %c1_i32 : i32
    %c1_i32_0 = arith.constant 1 : i32
    %1 = arith.cmpi sle, %arg2, %c1_i32_0 : i32
    %2 = arith.andi %0, %1 : i1
    %3 = arith.extui %2 : i1 to i32
    %c0_i32 = arith.constant 0 : i32
    %4 = arith.cmpi ne, %3, %c0_i32 : i32
    scf.if %4 {
      %c1_i32_2 = arith.constant 1 : i32
      %8 = arith.subi %arg2, %c1_i32_2 : i32
      %c80_i32 = arith.constant 80 : i32
      %9 = arith.muli %8, %c80_i32 : i32
      %c0_i32_3 = arith.constant 0 : i32
      %10 = arith.addi %9, %c0_i32_3 : i32
      %11 = tpu.assume_multiple %10, 8 : i32
      %c0 = arith.constant 0 : index
      %12 = arith.index_cast %11 : i32 to index
      %c0_4 = arith.constant 0 : index
      %13 = vector.load %arg3[%c0, %12, %c0_4] : memref<1x120x64xbf16, #tpu.memory_space<vmem>>, vector<1x88x64xbf16>
      %14 = vector.shape_cast %13 : vector<1x88x64xbf16> to vector<88x64xbf16>
      %15 = vector.extract_strided_slice %14 {offsets = [0, 0], sizes = [80, 64], strides = [1, 1]} : vector<88x64xbf16> to vector<80x64xbf16>
      %c0_5 = arith.constant 0 : index
      %c0_6 = arith.constant 0 : index
      %c0_7 = arith.constant 0 : index
      %16 = vector.load %arg4[%c0_5, %c0_6, %c0_7] : memref<9x64x64xbf16, #tpu.memory_space<vmem>>, vector<1x64x64xbf16>
      %17 = vector.shape_cast %16 : vector<1x64x64xbf16> to vector<64x64xbf16>
      %cst = arith.constant dense<0.000000e+00> : vector<80x64xf32>
      %18 = tpu.matmul %15, %17, %cst {dimension_numbers = #tpu.dot_dimension_numbers<[1], [0], [0], [1], [0, 0, 1, 1], [], []>} : vector<80x64xbf16>, vector<64x64xbf16>, vector<80x64xf32> -> vector<80x64xf32>
      %c0_8 = arith.constant 0 : index
      %c0_9 = arith.constant 0 : index
      %19 = vector.load %arg8[%c0_8, %c0_9] : memref<80x64xf32, #tpu.memory_space<vmem>>, vector<80x64xf32>
      tpu.vector_store %arg8[%c0_8, %c0_9], %18 {strides = array<i32>} : memref<80x64xf32, #tpu.memory_space<vmem>>, vector<80x64xf32>,
      %c0_i32_10 = arith.constant 0 : i32
      %20 = arith.addi %9, %c0_i32_10 : i32
      %21 = tpu.assume_multiple %20, 8 : i32
      %c0_11 = arith.constant 0 : index
      %22 = arith.index_cast %21 : i32 to index
      %c0_12 = arith.constant 0 : index
      %23 = vector.load %arg3[%c0_11, %22, %c0_12] : memref<1x120x64xbf16, #tpu.memory_space<vmem>>, vector<1x88x64xbf16>
      %24 = vector.shape_cast %23 : vector<1x88x64xbf16> to vector<88x64xbf16>
      %25 = vector.extract_strided_slice %24 {offsets = [1, 0], sizes = [80, 64], strides = [1, 1]} : vector<88x64xbf16> to vector<80x64xbf16>
      %c1 = arith.constant 1 : index
      %c0_13 = arith.constant 0 : index
      %c0_14 = arith.constant 0 : index
      %26 = vector.load %arg4[%c1, %c0_13, %c0_14] : memref<9x64x64xbf16, #tpu.memory_space<vmem>>, vector<1x64x64xbf16>
      %27 = vector.shape_cast %26 : vector<1x64x64xbf16> to vector<64x64xbf16>
      %cst_15 = arith.constant dense<0.000000e+00> : vector<80x64xf32>
      %28 = tpu.matmul %25, %27, %cst_15 {dimension_numbers = #tpu.dot_dimension_numbers<[1], [0], [0], [1], [0, 0, 1, 1], [], []>} : vector<80x64xbf16>, vector<64x64xbf16>, vector<80x64xf32> -> vector<80x64xf32>
      %c0_16 = arith.constant 0 : index
      %c0_17 = arith.constant 0 : index
      %29 = vector.load %arg8[%c0_16, %c0_17] : memref<80x64xf32, #tpu.memory_space<vmem>>, vector<80x64xf32>
      %30 = arith.addf %29, %28 : vector<80x64xf32>
      %c0_18 = arith.constant 0 : index
      %c0_19 = arith.constant 0 : index
      %31 = vector.load %arg8[%c0_18, %c0_19] : memref<80x64xf32, #tpu.memory_space<vmem>>, vector<80x64xf32>
      tpu.vector_store %arg8[%c0_18, %c0_19], %30 {strides = array<i32>} : memref<80x64xf32, #tpu.memory_space<vmem>>, vector<80x64xf32>,
      %c0_i32_20 = arith.constant 0 : i32
      %32 = arith.addi %9, %c0_i32_20 : i32
      %33 = tpu.assume_multiple %32, 8 : i32
      %c0_21 = arith.constant 0 : index
      %34 = arith.index_cast %33 : i32 to index
      %c0_22 = arith.constant 0 : index
      %35 = vector.load %arg3[%c0_21, %34, %c0_22] : memref<1x120x64xbf16, #tpu.memory_space<vmem>>, vector<1x88x64xbf16>
      %36 = vector.shape_cast %35 : vector<1x88x64xbf16> to vector<88x64xbf16>
      %37 = vector.extract_strided_slice %36 {offsets = [2, 0], sizes = [80, 64], strides = [1, 1]} : vector<88x64xbf16> to vector<80x64xbf16>
      %c2 = arith.constant 2 : index
      %c0_23 = arith.constant 0 : index
      %c0_24 = arith.constant 0 : index
      %38 = vector.load %arg4[%c2, %c0_23, %c0_24] : memref<9x64x64xbf16, #tpu.memory_space<vmem>>, vector<1x64x64xbf16>
      %39 = vector.shape_cast %38 : vector<1x64x64xbf16> to vector<64x64xbf16>
      %cst_25 = arith.constant dense<0.000000e+00> : vector<80x64xf32>
      %40 = tpu.matmul %37, %39, %cst_25 {dimension_numbers = #tpu.dot_dimension_numbers<[1], [0], [0], [1], [0, 0, 1, 1], [], []>} : vector<80x64xbf16>, vector<64x64xbf16>, vector<80x64xf32> -> vector<80x64xf32>
      %c0_26 = arith.constant 0 : index
      %c0_27 = arith.constant 0 : index
      %41 = vector.load %arg8[%c0_26, %c0_27] : memref<80x64xf32, #tpu.memory_space<vmem>>, vector<80x64xf32>
      %42 = arith.addf %41, %40 : vector<80x64xf32>
      %c0_28 = arith.constant 0 : index
      %c0_29 = arith.constant 0 : index
      %43 = vector.load %arg8[%c0_28, %c0_29] : memref<80x64xf32, #tpu.memory_space<vmem>>, vector<80x64xf32>
      tpu.vector_store %arg8[%c0_28, %c0_29], %42 {strides = array<i32>} : memref<80x64xf32, #tpu.memory_space<vmem>>, vector<80x64xf32>,
      %c8_i32 = arith.constant 8 : i32
      %44 = arith.addi %9, %c8_i32 : i32
      %45 = tpu.assume_multiple %44, 8 : i32
      %c0_30 = arith.constant 0 : index
      %46 = arith.index_cast %45 : i32 to index
      %c0_31 = arith.constant 0 : index
      %47 = vector.load %arg3[%c0_30, %46, %c0_31] : memref<1x120x64xbf16, #tpu.memory_space<vmem>>, vector<1x88x64xbf16>
      %48 = vector.shape_cast %47 : vector<1x88x64xbf16> to vector<88x64xbf16>
      %49 = vector.extract_strided_slice %48 {offsets = [2, 0], sizes = [80, 64], strides = [1, 1]} : vector<88x64xbf16> to vector<80x64xbf16>
      %c3 = arith.constant 3 : index
      %c0_32 = arith.constant 0 : index
      %c0_33 = arith.constant 0 : index
      %50 = vector.load %arg4[%c3, %c0_32, %c0_33] : memref<9x64x64xbf16, #tpu.memory_space<vmem>>, vector<1x64x64xbf16>
      %51 = vector.shape_cast %50 : vector<1x64x64xbf16> to vector<64x64xbf16>
      %cst_34 = arith.constant dense<0.000000e+00> : vector<80x64xf32>
      %52 = tpu.matmul %49, %51, %cst_34 {dimension_numbers = #tpu.dot_dimension_numbers<[1], [0], [0], [1], [0, 0, 1, 1], [], []>} : vector<80x64xbf16>, vector<64x64xbf16>, vector<80x64xf32> -> vector<80x64xf32>
      %c0_35 = arith.constant 0 : index
      %c0_36 = arith.constant 0 : index
      %53 = vector.load %arg8[%c0_35, %c0_36] : memref<80x64xf32, #tpu.memory_space<vmem>>, vector<80x64xf32>
      %54 = arith.addf %53, %52 : vector<80x64xf32>
      %c0_37 = arith.constant 0 : index
      %c0_38 = arith.constant 0 : index
      %55 = vector.load %arg8[%c0_37, %c0_38] : memref<80x64xf32, #tpu.memory_space<vmem>>, vector<80x64xf32>
      tpu.vector_store %arg8[%c0_37, %c0_38], %54 {strides = array<i32>} : memref<80x64xf32, #tpu.memory_space<vmem>>, vector<80x64xf32>,
      %c8_i32_39 = arith.constant 8 : i32
      %56 = arith.addi %9, %c8_i32_39 : i32
      %57 = tpu.assume_multiple %56, 8 : i32
      %c0_40 = arith.constant 0 : index
      %58 = arith.index_cast %57 : i32 to index
      %c0_41 = arith.constant 0 : index
      %59 = vector.load %arg3[%c0_40, %58, %c0_41] : memref<1x120x64xbf16, #tpu.memory_space<vmem>>, vector<1x88x64xbf16>
      %60 = vector.shape_cast %59 : vector<1x88x64xbf16> to vector<88x64xbf16>
      %61 = vector.extract_strided_slice %60 {offsets = [3, 0], sizes = [80, 64], strides = [1, 1]} : vector<88x64xbf16> to vector<80x64xbf16>
      %c4 = arith.constant 4 : index
      %c0_42 = arith.constant 0 : index
      %c0_43 = arith.constant 0 : index
      %62 = vector.load %arg4[%c4, %c0_42, %c0_43] : memref<9x64x64xbf16, #tpu.memory_space<vmem>>, vector<1x64x64xbf16>
      %63 = vector.shape_cast %62 : vector<1x64x64xbf16> to vector<64x64xbf16>
      %cst_44 = arith.constant dense<0.000000e+00> : vector<80x64xf32>
      %64 = tpu.matmul %61, %63, %cst_44 {dimension_numbers = #tpu.dot_dimension_numbers<[1], [0], [0], [1], [0, 0, 1, 1], [], []>} : vector<80x64xbf16>, vector<64x64xbf16>, vector<80x64xf32> -> vector<80x64xf32>
      %c0_45 = arith.constant 0 : index
      %c0_46 = arith.constant 0 : index
      %65 = vector.load %arg8[%c0_45, %c0_46] : memref<80x64xf32, #tpu.memory_space<vmem>>, vector<80x64xf32>
      %66 = arith.addf %65, %64 : vector<80x64xf32>
      %c0_47 = arith.constant 0 : index
      %c0_48 = arith.constant 0 : index
      %67 = vector.load %arg8[%c0_47, %c0_48] : memref<80x64xf32, #tpu.memory_space<vmem>>, vector<80x64xf32>
      tpu.vector_store %arg8[%c0_47, %c0_48], %66 {strides = array<i32>} : memref<80x64xf32, #tpu.memory_space<vmem>>, vector<80x64xf32>,
      %c8_i32_49 = arith.constant 8 : i32
      %68 = arith.addi %9, %c8_i32_49 : i32
      %69 = tpu.assume_multiple %68, 8 : i32
      %c0_50 = arith.constant 0 : index
      %70 = arith.index_cast %69 : i32 to index
      %c0_51 = arith.constant 0 : index
      %71 = vector.load %arg3[%c0_50, %70, %c0_51] : memref<1x120x64xbf16, #tpu.memory_space<vmem>>, vector<1x88x64xbf16>
      %72 = vector.shape_cast %71 : vector<1x88x64xbf16> to vector<88x64xbf16>
      %73 = vector.extract_strided_slice %72 {offsets = [4, 0], sizes = [80, 64], strides = [1, 1]} : vector<88x64xbf16> to vector<80x64xbf16>
      %c5 = arith.constant 5 : index
      %c0_52 = arith.constant 0 : index
      %c0_53 = arith.constant 0 : index
      %74 = vector.load %arg4[%c5, %c0_52, %c0_53] : memref<9x64x64xbf16, #tpu.memory_space<vmem>>, vector<1x64x64xbf16>
      %75 = vector.shape_cast %74 : vector<1x64x64xbf16> to vector<64x64xbf16>
      %cst_54 = arith.constant dense<0.000000e+00> : vector<80x64xf32>
      %76 = tpu.matmul %73, %75, %cst_54 {dimension_numbers = #tpu.dot_dimension_numbers<[1], [0], [0], [1], [0, 0, 1, 1], [], []>} : vector<80x64xbf16>, vector<64x64xbf16>, vector<80x64xf32> -> vector<80x64xf32>
      %c0_55 = arith.constant 0 : index
      %c0_56 = arith.constant 0 : index
      %77 = vector.load %arg8[%c0_55, %c0_56] : memref<80x64xf32, #tpu.memory_space<vmem>>, vector<80x64xf32>
      %78 = arith.addf %77, %76 : vector<80x64xf32>
      %c0_57 = arith.constant 0 : index
      %c0_58 = arith.constant 0 : index
      %79 = vector.load %arg8[%c0_57, %c0_58] : memref<80x64xf32, #tpu.memory_space<vmem>>, vector<80x64xf32>
      tpu.vector_store %arg8[%c0_57, %c0_58], %78 {strides = array<i32>} : memref<80x64xf32, #tpu.memory_space<vmem>>, vector<80x64xf32>,
      %c16_i32 = arith.constant 16 : i32
      %80 = arith.addi %9, %c16_i32 : i32
      %81 = tpu.assume_multiple %80, 8 : i32
      %c0_59 = arith.constant 0 : index
      %82 = arith.index_cast %81 : i32 to index
      %c0_60 = arith.constant 0 : index
      %83 = vector.load %arg3[%c0_59, %82, %c0_60] : memref<1x120x64xbf16, #tpu.memory_space<vmem>>, vector<1x88x64xbf16>
      %84 = vector.shape_cast %83 : vector<1x88x64xbf16> to vector<88x64xbf16>
      %85 = vector.extract_strided_slice %84 {offsets = [4, 0], sizes = [80, 64], strides = [1, 1]} : vector<88x64xbf16> to vector<80x64xbf16>
      %c6 = arith.constant 6 : index
      %c0_61 = arith.constant 0 : index
      %c0_62 = arith.constant 0 : index
      %86 = vector.load %arg4[%c6, %c0_61, %c0_62] : memref<9x64x64xbf16, #tpu.memory_space<vmem>>, vector<1x64x64xbf16>
      %87 = vector.shape_cast %86 : vector<1x64x64xbf16> to vector<64x64xbf16>
      %cst_63 = arith.constant dense<0.000000e+00> : vector<80x64xf32>
      %88 = tpu.matmul %85, %87, %cst_63 {dimension_numbers = #tpu.dot_dimension_numbers<[1], [0], [0], [1], [0, 0, 1, 1], [], []>} : vector<80x64xbf16>, vector<64x64xbf16>, vector<80x64xf32> -> vector<80x64xf32>
      %c0_64 = arith.constant 0 : index
      %c0_65 = arith.constant 0 : index
      %89 = vector.load %arg8[%c0_64, %c0_65] : memref<80x64xf32, #tpu.memory_space<vmem>>, vector<80x64xf32>
      %90 = arith.addf %89, %88 : vector<80x64xf32>
      %c0_66 = arith.constant 0 : index
      %c0_67 = arith.constant 0 : index
      %91 = vector.load %arg8[%c0_66, %c0_67] : memref<80x64xf32, #tpu.memory_space<vmem>>, vector<80x64xf32>
      tpu.vector_store %arg8[%c0_66, %c0_67], %90 {strides = array<i32>} : memref<80x64xf32, #tpu.memory_space<vmem>>, vector<80x64xf32>,
      %c16_i32_68 = arith.constant 16 : i32
      %92 = arith.addi %9, %c16_i32_68 : i32
      %93 = tpu.assume_multiple %92, 8 : i32
      %c0_69 = arith.constant 0 : index
      %94 = arith.index_cast %93 : i32 to index
      %c0_70 = arith.constant 0 : index
      %95 = vector.load %arg3[%c0_69, %94, %c0_70] : memref<1x120x64xbf16, #tpu.memory_space<vmem>>, vector<1x88x64xbf16>
      %96 = vector.shape_cast %95 : vector<1x88x64xbf16> to vector<88x64xbf16>
      %97 = vector.extract_strided_slice %96 {offsets = [5, 0], sizes = [80, 64], strides = [1, 1]} : vector<88x64xbf16> to vector<80x64xbf16>
      %c7 = arith.constant 7 : index
      %c0_71 = arith.constant 0 : index
      %c0_72 = arith.constant 0 : index
      %98 = vector.load %arg4[%c7, %c0_71, %c0_72] : memref<9x64x64xbf16, #tpu.memory_space<vmem>>, vector<1x64x64xbf16>
      %99 = vector.shape_cast %98 : vector<1x64x64xbf16> to vector<64x64xbf16>
      %cst_73 = arith.constant dense<0.000000e+00> : vector<80x64xf32>
      %100 = tpu.matmul %97, %99, %cst_73 {dimension_numbers = #tpu.dot_dimension_numbers<[1], [0], [0], [1], [0, 0, 1, 1], [], []>} : vector<80x64xbf16>, vector<64x64xbf16>, vector<80x64xf32> -> vector<80x64xf32>
      %c0_74 = arith.constant 0 : index
      %c0_75 = arith.constant 0 : index
      %101 = vector.load %arg8[%c0_74, %c0_75] : memref<80x64xf32, #tpu.memory_space<vmem>>, vector<80x64xf32>
      %102 = arith.addf %101, %100 : vector<80x64xf32>
      %c0_76 = arith.constant 0 : index
      %c0_77 = arith.constant 0 : index
      %103 = vector.load %arg8[%c0_76, %c0_77] : memref<80x64xf32, #tpu.memory_space<vmem>>, vector<80x64xf32>
      tpu.vector_store %arg8[%c0_76, %c0_77], %102 {strides = array<i32>} : memref<80x64xf32, #tpu.memory_space<vmem>>, vector<80x64xf32>,
      %c16_i32_78 = arith.constant 16 : i32
      %104 = arith.addi %9, %c16_i32_78 : i32
      %105 = tpu.assume_multiple %104, 8 : i32
      %c0_79 = arith.constant 0 : index
      %106 = arith.index_cast %105 : i32 to index
      %c0_80 = arith.constant 0 : index
      %107 = vector.load %arg3[%c0_79, %106, %c0_80] : memref<1x120x64xbf16, #tpu.memory_space<vmem>>, vector<1x88x64xbf16>
      %108 = vector.shape_cast %107 : vector<1x88x64xbf16> to vector<88x64xbf16>
      %109 = vector.extract_strided_slice %108 {offsets = [6, 0], sizes = [80, 64], strides = [1, 1]} : vector<88x64xbf16> to vector<80x64xbf16>
      %c8 = arith.constant 8 : index
      %c0_81 = arith.constant 0 : index
      %c0_82 = arith.constant 0 : index
      %110 = vector.load %arg4[%c8, %c0_81, %c0_82] : memref<9x64x64xbf16, #tpu.memory_space<vmem>>, vector<1x64x64xbf16>
      %111 = vector.shape_cast %110 : vector<1x64x64xbf16> to vector<64x64xbf16>
      %cst_83 = arith.constant dense<0.000000e+00> : vector<80x64xf32>
      %112 = tpu.matmul %109, %111, %cst_83 {dimension_numbers = #tpu.dot_dimension_numbers<[1], [0], [0], [1], [0, 0, 1, 1], [], []>} : vector<80x64xbf16>, vector<64x64xbf16>, vector<80x64xf32> -> vector<80x64xf32>
      %c0_84 = arith.constant 0 : index
      %c0_85 = arith.constant 0 : index
      %113 = vector.load %arg8[%c0_84, %c0_85] : memref<80x64xf32, #tpu.memory_space<vmem>>, vector<80x64xf32>
      %114 = arith.addf %113, %112 : vector<80x64xf32>
      %c0_86 = arith.constant 0 : index
      %c0_87 = arith.constant 0 : index
      %115 = vector.load %arg8[%c0_86, %c0_87] : memref<80x64xf32, #tpu.memory_space<vmem>>, vector<80x64xf32>
      tpu.vector_store %arg8[%c0_86, %c0_87], %114 {strides = array<i32>} : memref<80x64xf32, #tpu.memory_space<vmem>>, vector<80x64xf32>,
      %c0_88 = arith.constant 0 : index
      %c0_89 = arith.constant 0 : index
      %116 = vector.load %arg8[%c0_88, %c0_89] : memref<80x64xf32, #tpu.memory_space<vmem>>, vector<80x64xf32>
      %c0_90 = arith.constant 0 : index
      %c0_91 = arith.constant 0 : index
      %117 = vector.load %arg5[%c0_90, %c0_91] : memref<1x64xf32, #tpu.memory_space<vmem>>, vector<1x64xf32>
      %118 = vector.broadcast %117 : vector<1x64xf32> to vector<80x64xf32>
      %119 = arith.addf %116, %118 : vector<80x64xf32>
      %cst_92 = arith.constant 0.000000e+00 : f32
      %120 = vector.broadcast %cst_92 : f32 to vector<80x64xf32>
      %121 = arith.maximumf %119, %120 : vector<80x64xf32>
      %c0_93 = arith.constant 0 : index
      %c0_94 = arith.constant 0 : index
      %122 = vector.load %arg6[%c0_93, %c0_94] : memref<80x1xf32, #tpu.memory_space<vmem>>, vector<80x1xf32>
      %123 = vector.broadcast %122 : vector<80x1xf32> to vector<80x64xf32>
      %124 = arith.mulf %121, %123 : vector<80x64xf32>
      %125 = arith.truncf %124 : vector<80x64xf32> to vector<80x64xbf16>
      %c0_95 = arith.constant 0 : index
      %c0_96 = arith.constant 0 : index
      %c0_97 = arith.constant 0 : index
      %126 = vector.load %arg7[%c0_95, %c0_96, %c0_97] : memref<1x80x64xbf16, #tpu.memory_space<vmem>>, vector<1x80x64xbf16>
      %127 = vector.shape_cast %126 : vector<1x80x64xbf16> to vector<80x64xbf16>
      %128 = vector.shape_cast %125 : vector<80x64xbf16> to vector<1x80x64xbf16>
      tpu.vector_store %arg7[%c0_95, %c0_96, %c0_97], %128 {strides = array<i32>} : memref<1x80x64xbf16, #tpu.memory_space<vmem>>, vector<1x80x64xbf16>,
    } else {
    }
    %true = arith.constant true
    %5 = arith.xori %2, %true : i1
    %6 = arith.extui %5 : i1 to i32
    %c0_i32_1 = arith.constant 0 : i32
    %7 = arith.cmpi ne, %6, %c0_i32_1 : i32
    scf.if %7 {
      %cst = arith.constant 0.000000e+00 : bf16
      %8 = vector.broadcast %cst : bf16 to vector<80x64xbf16>
      %c0 = arith.constant 0 : index
      %c0_2 = arith.constant 0 : index
      %c0_3 = arith.constant 0 : index
      %9 = vector.load %arg7[%c0, %c0_2, %c0_3] : memref<1x80x64xbf16, #tpu.memory_space<vmem>>, vector<1x80x64xbf16>
      %10 = vector.shape_cast %9 : vector<1x80x64xbf16> to vector<80x64xbf16>
      %11 = vector.shape_cast %8 : vector<80x64xbf16> to vector<1x80x64xbf16>
      tpu.vector_store %arg7[%c0, %c0_2, %c0_3], %11 {strides = array<i32>} : memref<1x80x64xbf16, #tpu.memory_space<vmem>>, vector<1x80x64xbf16>,
    } else {
    }
    return
  }
  func.func @transform_0(%arg0: i32, %arg1: i32, %arg2: i32) -> (i32, i32, i32) {
    %c0_i32 = arith.constant 0 : i32
    %c0_i32_0 = arith.constant 0 : i32
    %c0_i32_1 = arith.constant 0 : i32
    return %arg0, %c0_i32, %c0_i32_0 : i32, i32, i32
  }
  func.func @transform_1(%arg0: i32, %arg1: i32, %arg2: i32) -> (i32, i32, i32) {
    %c0_i32 = arith.constant 0 : i32
    %c0_i32_0 = arith.constant 0 : i32
    %c0_i32_1 = arith.constant 0 : i32
    return %c0_i32, %c0_i32_0, %arg1 : i32, i32, i32
  }
  func.func @transform_2(%arg0: i32, %arg1: i32, %arg2: i32) -> (i32, i32) {
    %c0_i32 = arith.constant 0 : i32
    %c0_i32_0 = arith.constant 0 : i32
    return %c0_i32, %arg1 : i32, i32
  }
  func.func @transform_3(%arg0: i32, %arg1: i32, %arg2: i32) -> (i32, i32) {
    %c0_i32 = arith.constant 0 : i32
    %c0_i32_0 = arith.constant 0 : i32
    return %arg2, %c0_i32 : i32, i32
  }
  func.func @transform_4(%arg0: i32, %arg1: i32, %arg2: i32) -> (i32, i32, i32) {
    %c0_i32 = arith.constant 0 : i32
    return %arg0, %arg2, %arg1 : i32, i32, i32
  }
}

</mosaic_0001>

<bundles_post_ra>
// kernel: tpu_custom_call.1
= control target key start
LH: loop header
LB: loop body
LE: loop exit
PB: predicated region body
PF: predicated region fallthrough
CT: control target
= control target key end

     0   :  { %s3271_s15 = smov 0   ;;  %s3273_s16 = smov 0   ;;  %s3882_s0 = inlined_call_operand.vmem [shape: bf16[1,120,64], index: 0, kind: input, shape index: {}]   ;;  %s3883_s1 = inlined_call_operand.vmem [shape: bf16[9,64,64], index: 1, kind: input, shape index: {}]   ;;  %s3884_s2 = inlined_call_operand.vmem [shape: f32[1,64], index: 2, kind: input, shape index: {}]   ;;  %s3885_s3 = inlined_call_operand.vmem [shape: f32[240,1], index: 3, kind: input, shape index: {}]   ;;  %s3886_s4 = inlined_call_operand.vmem [shape: bf16[1,240,64], index: 4, kind: output, shape index: {}]  }
   0x1   :  { %s3275_s17 = smov 0  }
   0x2 LB: > { %s26_s18 = sadd.s32 1, %s3236_s16  ;;  %p2530_p0 = scmp.ge.s32.totalorder %s3240_s17, 1  ;;  %s3240_s17 = sphi %s3275_s17, %s14_s17   ;;  %s3236_s16 = sphi %s3273_s16, %s3889_s16   ;;  %s3232_s15 = sphi %s3271_s15, %s3888_s15  }
   0x3   : > { %p27_p1 = scmp.ge.s32.totalorder %s26_s18, 3  ;;  %p213_p2 = scmp.lt.s32.totalorder %s3240_s17, 4 }
   0x5   : > { %s3891_s18 = smov (%p27_p1, %s26_s18), 0  ;;  %p214_p3 = pnand %p2530_p0, %p213_p2 }
   0x6   : > { %s270_s19 = smul.u32 (!%p214_p3), 10, %s3232_s15  ;;  %p290_p4 = scmp.ge.s32.totalorder (!%p214_p3), %s3232_s15, 1 }
   0x7   : > { %217 = sbr.rel (%p214_p3) target bundleno = 460 (0x1cc), region = 36  ;;  %p291_p5 = scmp.le.s32.totalorder (!%p214_p3), %s3232_s15, 1 }
   0x8   : > { %p271_p6 = scmp.lt.s32.totalorder (!%p214_p3), %s270_s19, 29 }
   0x9   : > { %p3294_p7 = pnand (!%p214_p3), %p291_p5, %p290_p4 }
   0xe   : > { %s3893_s19 = smov (!%p271_p6, %s270_s19), 29  ;;  %295 = sbr.rel (%p3294_p7) target bundleno = 453 (0x1c5), region = 40 }
   0xf   : > { %s2531_s21 = sshll.u32 %s3893_s19, 3  ;;  %s2532_s22 = sshll.u32 %s3893_s19, 2  ;;  %v3129_v0 = vld [vmem:[%s3883_s1] sm:$0xff] (!%p3294_p7)   ;;  %v3242_v1 = vmov (!%p3294_p7), 0.0   ;;  %v3130_v2 = vld [vmem:[%s3883_s1 + $0x8] sm:$0xff] (!%p3294_p7)   ;;  %vm3243_vm0 = vmmov (!%p3294_p7), 0  }
  0x10   : > { %s3301_s25 = scalar_lea.vmem %s3885_s3, %s2531_s21  ;;  %s3306_s28 = scalar_lea.vmem %s3886_s4, %s2532_s22  ;;  %3091 = vmatprep.subr.bf16.mxu1 (!%p3294_p7), %v3242_v1  ;;  %2839 = vmatprep.subr.bf16.mxu0 (!%p3294_p7), %v3242_v1  ;;  %v3131_v3 = vld [vmem:[%s3883_s1 + $0x10] sm:$0xff] (!%p3294_p7)   ;;  %v3132_v4 = vld [vmem:[%s3883_s1 + $0x18] sm:$0xff] (!%p3294_p7)   ;;  %vm369_vm1 = vcmask (!%p3294_p7), 523264   ;;  %v3134_v6 = vld [vmem:[%s3883_s1 + $0x20] sm:$0xff] (!%p3294_p7)   ;;  %vm751_vm2 = vcmask (!%p3294_p7), 1046528   ;;  %vm1403_vm5 = vcmask (!%p3294_p7), 1045504  }
  0x11   : > { %3095 = vmatpush3.bf16.msra.mxu1 (!%p3294_p7), %v3129_v0  ;;  %2855 = vmatprep.mubr.msk.bf16.mxu1 (!%p3294_p7), %vm3243_vm0, %v3242_v1  ;;  %s2533_s7 = sadd.s32 (!%p3294_p7), 4294967295, %s3232_s15  ;;  %v3140_v8 = vld [vmem:[%s3883_s1 + $0x40] sm:$0xff] (!%p3294_p7)   ;;  %v3135_v9 = vld [vmem:[%s3883_s1 + $0x28] sm:$0xff] (!%p3294_p7)   ;;  %v3137_v11 = vld [vmem:[%s3883_s1 + $0x30] sm:$0xff] (!%p3294_p7)   ;;  %vm516_vm3 = vsmask.f32 (!%p3294_p7), 7424 }
  0x12   : > { %3092 = vmatprep.subr.bf16.mxu1 (!%p3294_p7), %v3242_v1  ;;  %s3322_s8 = smul.u32 (!%p3294_p7), 80, %s2533_s7  ;;  %2840 = vmatpush3.bf16.msra.mxu0 (!%p3294_p7), %v3129_v0  ;;  %v3142_v12 = vld [vmem:[%s3883_s1 + $0x48] sm:$0xff] (!%p3294_p7)   ;;  %v3146_v15 = vld [vmem:[%s3883_s1 + $0x50] sm:$0xff] (!%p3294_p7)   ;;  %v3141_v18 = vld [vmem:[%s3883_s1 + $0x38] sm:$0xff] (!%p3294_p7)   ;;  %vm1159_vm4 = vsmask.f32 (!%p3294_p7), 6400 }
  0x13   : > { %2841 = vmatprep.subr.bf16.mxu0 (!%p3294_p7), %v3242_v1  ;;  %2847 = vmatprep.mubr.msk.bf16.mxu0 (!%p3294_p7), %vm3243_vm0, %v3242_v1  ;;  %v3148_v22 = vld [vmem:[%s3883_s1 + $0x58] sm:$0xff] (!%p3294_p7)   ;;  %v3153_v28 = vld [vmem:[%s3883_s1 + $0x80] sm:$0xff] (!%p3294_p7)   ;;  %v3157_v35 = vld [vmem:[%s3883_s1 + $0x88] sm:$0xff] (!%p3294_p7)   ;;  %vm2055_vm6 = vcmask (!%p3294_p7), 1044480   ;;  %vm1811_vm7 = vsmask.f32 (!%p3294_p7), 5376 }
  0x14   : > { %s298_s9 = sshra.s32 (!%p3294_p7), %s3322_s8, 3  ;;  %s905_s11 = sadd.s32 (!%p3294_p7), 8, %s3322_s8  ;;  %v3147_v38 = vld [vmem:[%s3883_s1 + $0x60] sm:$0xff] (!%p3294_p7)   ;;  %v3161_v41 = vld [vmem:[%s3883_s1 + $0x90] sm:$0xff] (!%p3294_p7)   ;;  %v3152_v42 = vld [vmem:[%s3883_s1 + $0x68] sm:$0xff] (!%p3294_p7)   ;;  %vm2356_vm8 = vcmask (!%p3294_p7), 519168  }
  0x15   : > { %3096 = vmatpush3.bf16.msra.mxu1 %v3130_v2  ;;  %s2534_s12 = sshll.u32 %s298_s9, 2  ;;  %s906_s14 = sshra.s32 %s905_s11, 3  ;;  %v3167_v48 = vld [vmem:[%s3883_s1 + $0x98] sm:$0xff]   ;;  %v3156_v52 = vld [vmem:[%s3883_s1 + $0x70] sm:$0xff]  }
  0x16   : > { %3093 = vmatprep.subr.bf16.mxu1 %v3242_v1  ;;  %s3335_s15 = scalar_lea.vmem %s3882_s0, %s2534_s12  ;;  %2842 = vmatpush3.bf16.msra.mxu0 %v3130_v2  ;;  %s2595_s24 = sshll.u32 %s906_s14, 2  ;;  %v3160_v57 = vld [vmem:[%s3883_s1 + $0x78] sm:$0xff]  }
  0x17   : > { %2843 = vmatprep.subr.bf16.mxu0 %v3242_v1  ;;  %v3133_v5 = vld [vmem:[%s3335_s15 + $0x10] sm:$0xff]   ;;  %v3138_v7 = vld [vmem:[%s3335_s15] sm:$0xff]   ;;  %v3136_v10 = vld [vmem:[%s3335_s15 + $0x18] sm:$0xff]   ;;  %s3411_s29 = scalar_lea.vmem %s3882_s0, %s2595_s24  ;;  %s1557_s24 = sadd.s32 16, %s3322_s8 }
  0x18   : > { %v3143_v13 = vld [vmem:[%s3335_s15 + $0x8] sm:$0xff]   ;;  %v3144_v14 = vld [vmem:[%s3335_s15] sm:$0xff]   ;;  %v3155_v30 = vld [vmem:[%s3335_s15 + $0x10] sm:$0xff]   ;;  %s1558_s8 = sshra.s32 %s1557_s24, 3 }
  0x19   : > { %3097 = vmatpush3.bf16.msra.mxu1 %v3131_v3  ;;  %v3150_v16 = vld [vmem:[%s3335_s15] sm:$0xff]   ;;  %v3151_v17 = vld [vmem:[%s3335_s15 + $0x8] sm:$0xff]   ;;  %v520_v20 = vshll.u32 %v3144_v14, 16  ;;  %v518_v25 = vshrl.u32 %v3144_v14, 16  ;;  %v3149_v31 = vld [vmem:[%s3335_s15 + $0x10] sm:$0xff]   ;;  %v755_v34 = vrot.slane %v3155_v30, 1 }
  0x1a   : > { %3094 = vmatprep.subr.bf16.mxu1 %v3242_v1  ;;  %2844 = vmatpush3.bf16.msra.mxu0 %v3131_v3  ;;  %v3145_v19 = vld [vmem:[%s3335_s15 + $0x8] sm:$0xff]   ;;  %v3139_v21 = vld [vmem:[%s3335_s15 + $0x20] sm:$0xff]   ;;  %v752_v23 = vrot.slane %v3150_v16, 1  ;;  %v753_v24 = vrot.slane %v3151_v17, 1  ;;  %v533_v36 = vshll.u32 %v3149_v31, 16  ;;  %v3159_v40 = vld [vmem:[%s3335_s15 + $0x18] sm:$0xff]  }
  0x1b   : > { %2845 = vmatprep.subr.bf16.mxu0 %v3242_v1  ;;  %v522_v26 = vrot.slane %v520_v20, 1  ;;  %v525_v27 = vshll.u32 %v3145_v19, 16  ;;  %v529_v39 = vshrl.u32 %v3145_v19, 16  ;;  %v3154_v45 = vld [vmem:[%s3335_s15 + $0x18] sm:$0xff]   ;;  %v757_v47 = vrot.slane %v3159_v40, 1  ;;  %v3163_v53 = vld [vmem:[%s3335_s15 + $0x20] sm:$0xff]  }
  0x1c   : > { %v754_v29 = vsel %vm751_vm2, %v752_v23, %v753_v24  ;;  %v756_v43 = vsel %vm751_vm2, %v753_v24, %v755_v34  ;;  %v535_v44 = vrot.slane %v533_v36, 1  ;;  %v541_v49 = vshll.u32 %v3154_v45, 16  ;;  %v3158_v54 = vld [vmem:[%s3335_s15 + $0x20] sm:$0xff]   ;;  %v3459_v58 = vld [vmem:[%s3411_s29 + $0x18] sm:$0xff]   ;;  %s2665_s26 = sshll.u32 %s1558_s8, 2 }
  0x1d   : > { %3098 = vmatpush3.bf16.msra.mxu1 %v3132_v4  ;;  %v523_v32 = vor.u32 %v522_v26, %v518_v25  ;;  %v527_v33 = vrot.slane %v525_v27, 1  ;;  %v537_v51 = vshrl.u32 %v3149_v31, 16  ;;  %v758_v55 = vsel %vm751_vm2, %v755_v34, %v757_v47  ;;  %v3178_v61 = vld [vmem:[%s3411_s29 + $0x20] sm:$0xff]   ;;  %s3495_s30 = scalar_lea.vmem %s3882_s0, %s2665_s26  ;;  %v3175_v25 = vld [vmem:[%s3411_s29 + $0x10] sm:$0xff]  }
  0x1e   : > { %2867 = vmatprep.subr.bf16.mxu1 %v3242_v1  ;;  %2846 = vmatpush3.bf16.msra.mxu0 %v3132_v4  ;;  %v543_v56 = vrot.slane %v541_v49, 1  ;;  %v759_v60 = vrot.slane %v3163_v53, 1  ;;  %v3170_v62 = vld [vmem:[%s3411_s29] sm:$0xff]   ;;  %v963_v63 = vrot.slane %v3459_v58, 1  ;;  %v965_v0 = vrot.slane %v3178_v61, 1 }
  0x1f   : > { %2895 = vmatprep.subr.bf16.mxu0 %v3242_v1  ;;  %v528_v37 = vsel %vm516_vm3, %v523_v32, %v527_v33  ;;  %v531_v46 = vor.u32 %v529_v39, %v527_v33  ;;  %v539_v59 = vor.u32 %v537_v51, %v535_v44  ;;  %v545_v3 = vshrl.u32 %v3154_v45, 16  ;;  %v3165_v32 = vld [vmem:[%s3411_s29] sm:$0xff]   ;;  %v3177_v45 = vld [vmem:[%s3883_s1 + $0xc8] sm:$0xff]   ;;  %v3169_v51 = vld [vmem:[%s3411_s29 + $0x10] sm:$0xff]  }
  0x20   : > { %2856 = vmatmul.mubr.msk.bf16.vlgmr.msra.gmra.mrb[0].mxu1 %vm369_vm1, %v3133_v5  ;;  %v549_v4 = vshll.u32 %v3158_v54, 16  ;;  %v3164_v5 = vld [vmem:[%s3335_s15 + $0x28] ss:$0 sps:$4 sm:$0xff]   ;;  %v553_v20 = vshrl.u32 %v3158_v54, 16  ;;  %v1178_v31 = vshrl.u32 %v3175_v25, 16  ;;  %v3168_v49 = vld [vmem:[%s3883_s1 + $0xa0] sm:$0xff]  }
  0x21   : > { %2868 = vmatpush3.bf16.msra.mxu1 %v3134_v6  ;;  %2859 = vmatprep.mubr.msk.bf16.mxu1 %vm3243_vm0, %v3242_v1  ;;  %v536_v50 = vsel %vm516_vm3, %v531_v46, %v535_v44  ;;  %v544_v2 = vsel %vm516_vm3, %v539_v59, %v543_v56  ;;  %v3477_v6 = vsel %vm751_vm2, %v963_v63, %v965_v0  ;;  %v761_v17 = vrot.slane %v3164_v5, 1  ;;  %v3172_v59 = vld [vmem:[%s3883_s1 + $0xa8] sm:$0xff]  }
  0x22   : > { %2869 = vmatprep.subr.bf16.mxu1 %v3242_v1  ;;  %2848 = vmatmul.mubr.msk.bf16.vlgmr.msra.gmra.mrb[0].mxu0 %vm369_vm1, %v3138_v7  ;;  %v3182_v7 = vld [vmem:[%s3411_s29 + $0x28] ss:$0 sps:$4 sm:$0xff]   ;;  %v551_v14 = vrot.slane %v549_v4, 1  ;;  %v1180_v39 = vrot.slane %v1178_v31, 1  ;;  %v3189_v31 = vld [vmem:[%s3411_s29 + $0x10] sm:$0xff]  }
  0x23   : > { %2896 = vmatpush3.bf16.msra.mxu0 %v3140_v8  ;;  %2851 = vmatprep.mubr.msk.bf16.mxu0 %vm3243_vm0, %v3242_v1  ;;  %v760_v8 = vsel %vm751_vm2, %v757_v47, %v759_v60  ;;  %v762_v26 = vsel %vm751_vm2, %v759_v60, %v761_v17 }
  0x24   : > { %2897 = vmatprep.subr.bf16.mxu0 %v3242_v1 }
  0x25   : > { %2870 = vmatpush3.bf16.msra.mxu1 %v3135_v9  ;;  %v3171_v9 = vld [vmem:[%s3411_s29 + $0x8] sm:$0xff]  }
  0x26   : > { %2871 = vmatprep.subr.bf16.mxu1 %v3242_v1  ;;  %v1172_v19 = vshll.u32 %v3171_v9, 16 }
  0x27   : > { %2898 = vmatpush3.bf16.msra.mxu0 %v3142_v12  ;;  %v967_v12 = vrot.slane %v3182_v7, 1 }
  0x28   : > { %2860 = vmatmul.mubr.msk.bf16.gmra.mrb[4].mxu1 %vm369_vm1, %v3136_v10  ;;  %2899 = vmatprep.subr.bf16.mxu0 %v3242_v1  ;;  %v3162_v10 = vld [vmem:[%s3335_s15 + $0x28] ss:$0 sps:$4 sm:$0xff]  }
  0x29   : > { %2872 = vmatpush3.bf16.msra.mxu1 %v3137_v11  ;;  %2863 = vmatprep.mubr.msk.bf16.mxu1 %vm3243_vm0, %v3242_v1  ;;  %v1161_v11 = vshrl.u32 %v3170_v62, 16  ;;  %v3488_v16 = vsel %vm751_vm2, %v965_v0, %v967_v12  ;;  %v3187_v0 = vld [vmem:[%s3883_s1 + $0xd8] sm:$0xff]  }
  0x2a   : > { %2873 = vmatprep.subr.bf16.mxu1 %v3242_v1  ;;  %2852 = vmatmul.mubr.msk.bf16.gmra.mrb[4].mxu0 %vm369_vm1, %v3143_v13  ;;  %v547_v13 = vor.u32 %v545_v3, %v543_v56  ;;  %v3181_v56 = vld [vmem:[%s3883_s1 + $0xd0] sm:$0xff]  }
  0x2b   : > { %2900 = vmatpush3.bf16.msra.mxu0 %v3146_v15  ;;  %2903 = vmatprep.mubr.msk.bf16.mxu0 %vm3243_vm0, %v3242_v1  ;;  %v1164_v15 = vshll.u32 %v3170_v62, 16  ;;  %v3176_v3 = vld [vmem:[%s3883_s1 + $0xb0] sm:$0xff]  }
  0x2c   : > { %2901 = vmatprep.subr.bf16.mxu0 %v3242_v1  ;;  %v552_v23 = vsel %vm516_vm3, %v547_v13, %v551_v14 }
  0x2d   : > { %2874 = vmatpush3.bf16.msra.mxu1 %v3141_v18  ;;  %v1169_v18 = vshrl.u32 %v3171_v9, 16  ;;  %v1166_v24 = vrot.slane %v1164_v15, 2  ;;  %v3180_v9 = vld [vmem:[%s3883_s1 + $0xb8] sm:$0xff]  }
  0x2e   : > { %2923 = vmatprep.subr.bf16.mxu1 %v3242_v1 }
  0x2f   : > { %2902 = vmatpush3.bf16.msra.mxu0 %v3148_v22  ;;  %v1163_v22 = vrot.slane %v1161_v11, 1  ;;  %v1171_v27 = vrot.slane %v1169_v18, 1  ;;  %v3190_v18 = vld [vmem:[%s3495_s30] sm:$0xff]  }
  0x30   : > { %2864 = vmatmul.mubr.msk.bf16.gmra.mrb[8].mxu1 %vm369_vm1, %v3139_v21  ;;  %2951 = vmatprep.subr.bf16.mxu0 %v3242_v1  ;;  %v557_v21 = vshll.u32 %v3162_v10, 16 }
  0x31   : > { %2875 = vmatprep.mubr.msk.bf16.mxu1 %vm3243_vm0, %v3242_v1  ;;  %v1167_v33 = vor.u32 %v1166_v24, %v1163_v22  ;;  %v3185_v22 = vld [vmem:[%s3411_s29] sm:$0xff]  }
  0x32   : > { %2904 = vmatmul.mubr.msk.bf16.vlgmr.msra.gmra.mrb[8].mxu0 %vm369_vm1, %v754_v29  ;;  %v555_v29 = vor.u32 %v553_v20, %v551_v14  ;;  %v559_v30 = vrot.slane %v557_v21, 1  ;;  %v1610_v20 = vrot.slane %v3190_v18, 2  ;;  %v2250_v18 = vld [vmem:[%s3301_s25 + $0x20] sm:$0xff] }
  0x33   : > { %2952 = vmatpush3.bf16.msra.mxu0 %v3153_v28  ;;  %2907 = vmatprep.mubr.msk.bf16.mxu0 %vm3243_vm0, %v3242_v1  ;;  %v1174_v28 = vrot.slane %v1172_v19, 2  ;;  %v3191_v19 = vld [vmem:[%s3495_s30 + $0x8] sm:$0xff]  }
  0x34   : > { %2953 = vmatprep.subr.bf16.mxu0 %v3242_v1  ;;  %v560_v36 = vsel %vm516_vm3, %v555_v29, %v559_v30  ;;  %v1611_v21 = vrot.slane %v3191_v19, 2  ;;  %v3197_v29 = vld [vmem:[%s3883_s1 + $0x108] sm:$0xff]   ;;  %v3188_v30 = vld [vmem:[%s3883_s1 + $0xe0] sm:$0xff]  }
  0x35   : > { %v1175_v34 = vor.u32 %v1174_v28, %v1171_v27 }
  0x36   : > { %v1612_v24 = vsel %vm1403_vm5, %v1610_v20, %v1611_v21  ;;  %v3212_v20 = vld [vmem:[%s3495_s30 + $0x10] sm:$0xff]  }
  0x37   : > { %2954 = vmatpush3.bf16.msra.mxu0 %v3157_v35  ;;  %v1181_v35 = vshll.u32 %v3175_v25, 16  ;;  %v1176_v40 = vsel %vm1159_vm4, %v1167_v33, %v1175_v34  ;;  %v3195_v25 = vld [vmem:[%s3495_s30 + $0x10] sm:$0xff]   ;;  %v3199_v33 = vld [vmem:[%s3495_s30 + $0x18] sm:$0xff]  }
  0x38   : > { %2876 = vmatmul.mubr.msk.bf16.vlgmr.msra.gmra.mrb[12].mxu1 %vm369_vm1, %v528_v37  ;;  %2955 = vmatprep.subr.bf16.mxu0 %v3242_v1  ;;  %v3166_v37 = vld [vmem:[%s3411_s29 + $0x8] sm:$0xff]   ;;  %v1613_v28 = vrot.slane %v3195_v25, 2  ;;  %v2252_v25 = vld [vmem:[%s3301_s25 + $0x30] sm:$0xff] }
  0x39   : > { %2924 = vmatpush3.bf16.msra.mxu1 %v3147_v38  ;;  %2879 = vmatprep.mubr.msk.bf16.mxu1 %vm3243_vm0, %v3242_v1  ;;  %v3173_v38 = vld [vmem:[%s3883_s1 + $0xc0] sm:$0xff]   ;;  %v959_v44 = vrot.slane %v3166_v37, 1  ;;  %v1615_v37 = vrot.slane %v3199_v33, 2  ;;  %v3214_v33 = vld [vmem:[%s3495_s30 + $0x18] sm:$0xff]  }
  0x3a   : > { %2925 = vmatprep.subr.bf16.mxu1 %v3242_v1  ;;  %2908 = vmatmul.mubr.msk.bf16.gmra.mrb[12].mxu0 %vm369_vm1, %v756_v43  ;;  %v958_v43 = vrot.slane %v3165_v32, 1  ;;  %v1614_v32 = vsel %vm1403_vm5, %v1611_v21, %v1613_v28 }
  0x3b   : > { %2911 = vmatprep.mubr.msk.bf16.mxu0 %vm3243_vm0, %v3242_v1  ;;  %2956 = vmatpush3.bf16.msra.mxu0 %v3161_v41  ;;  %v1183_v41 = vrot.slane %v1181_v35, 2  ;;  %v1407_v35 = vrot.slane %v3189_v31, 2  ;;  %v2254_v31 = vld [vmem:[%s3301_s25 + $0x40] sm:$0xff] }
  0x3c   : > { %2957 = vmatprep.subr.bf16.mxu0 %v3242_v1 }
  0x3d   : > { %2926 = vmatpush3.bf16.msra.mxu1 %v3152_v42  ;;  %v3179_v42 = vld [vmem:[%s3411_s29 + $0x18] sm:$0xff]   ;;  %v1184_v46 = vor.u32 %v1183_v41, %v1180_v39  ;;  %v3196_v41 = vld [vmem:[%s3883_s1 + $0xf0] sm:$0xff]  }
  0x3e   : > { %2927 = vmatprep.subr.bf16.mxu1 %v3242_v1  ;;  %v1187_v47 = vshrl.u32 %v3179_v42, 16 }
  0x3f   : > { %2958 = vmatpush3.bf16.msra.mxu0 %v3167_v48  ;;  %v1190_v48 = vshll.u32 %v3179_v42, 16  ;;  %v1185_v53 = vsel %vm1159_vm4, %v1175_v34, %v1184_v46  ;;  %v3201_v34 = vld [vmem:[%s3883_s1 + $0x110] sm:$0xff]   ;;  %v1616_v42 = vsel %vm1403_vm5, %v1613_v28, %v1615_v37 }
  0x40   : > { %2880 = vmatmul.mubr.msk.bf16.gmra.mrb[16].mxu1 %vm369_vm1, %v536_v50  ;;  %3007 = vmatprep.subr.bf16.mxu0 %v3242_v1  ;;  %v960_v50 = vsel %vm751_vm2, %v958_v43, %v959_v44  ;;  %v1189_v54 = vrot.slane %v1187_v47, 1  ;;  %v3203_v43 = vld [vmem:[%s3495_s30 + $0x20] sm:$0xff]  }
  0x41   : > { %2883 = vmatprep.mubr.msk.bf16.mxu1 %vm3243_vm0, %v3242_v1  ;;  %2928 = vmatpush3.bf16.msra.mxu1 %v3156_v52  ;;  %v3183_v52 = vld [vmem:[%s3411_s29 + $0x20] sm:$0xff]  }
  0x42   : > { %2912 = vmatmul.mubr.msk.bf16.gmra.mrb[16].mxu0 %vm369_vm1, %v758_v55  ;;  %2929 = vmatprep.subr.bf16.mxu1 %v3242_v1  ;;  %v1192_v55 = vrot.slane %v1190_v48, 2  ;;  %v1196_v60 = vshrl.u32 %v3183_v52, 16  ;;  %v1199_v62 = vshll.u32 %v3183_v52, 16  ;;  %v3198_v48 = vld [vmem:[%s3411_s29 + $0x20] sm:$0xff]   ;;  %v3244_v52 = vmov 0  }
  0x43   : > { %2915 = vmatprep.mubr.msk.bf16.mxu0 %vm3243_vm0, %v3242_v1  ;;  %3127 = vset.pattern.permute.xlu0 %v3244_v52 }
  0x44   : > { %v1193_v61 = vor.u32 %v1192_v55, %v1189_v54  ;;  %v1198_v5 = vrot.slane %v1196_v60, 1  ;;  %v1201_v7 = vrot.slane %v1199_v62, 2  ;;  %3128 = vset.pattern.permute.xlu1 %v3244_v52  ;;  %v3202_v55 = vld [vmem:[%s3411_s29 + $0x28] ss:$0 sps:$4 sm:$0xff]  }
  0x45   : > { %2930 = vmatpush3.bf16.msra.mxu1 %v3160_v57  ;;  %v961_v57 = vrot.slane %v3169_v51, 1  ;;  %v1411_v51 = vrot.slane %v3198_v48, 2  ;;  %v2247_v60 = vld [vmem:[%s3301_s25 + $0x8] sm:$0xff] }
  0x46   : > { %2979 = vmatprep.subr.bf16.mxu1 %v3242_v1  ;;  %v1194_v4 = vsel %vm1159_vm4, %v1184_v46, %v1193_v61  ;;  %v1202_v10 = vor.u32 %v1201_v7, %v1198_v5  ;;  %v1617_v46 = vrot.slane %v3203_v43, 2  ;;  %v3216_v43 = vld [vmem:[%s3495_s30 + $0x20] sm:$0xff]  }
  0x47   : > { %v964_v13 = vsel %vm751_vm2, %v961_v57, %v963_v63 }
  0x48   : > { %2884 = vmatmul.mubr.msk.bf16.gmra.mrb[20].mxu1 %vm369_vm1, %v544_v2  ;;  %v962_v2 = vsel %vm751_vm2, %v959_v44, %v961_v57  ;;  %v1203_v14 = vsel %vm1159_vm4, %v1193_v61, %v1202_v10  ;;  %v2248_v61 = vld [vmem:[%s3301_s25 + $0x10] sm:$0xff] }
  0x49   : > { %2887 = vmatprep.mubr.msk.bf16.mxu1 %vm3243_vm0, %v3242_v1  ;;  %2268 = vperm.xlu1 %3128, %v2248_v61  }
  0x4a   : > { %2916 = vmatmul.mubr.msk.bf16.gmra.mrb[20].mxu0 %vm369_vm1, %v760_v8  ;;  %v3184_v8 = vld [vmem:[%s3411_s29 + $0x28] ss:$0 sps:$4 sm:$0xff]  }
  0x4b   : > { %2919 = vmatprep.mubr.msk.bf16.mxu0 %vm3243_vm0, %v3242_v1  ;;  %v1205_v11 = vshrl.u32 %v3184_v8, 16  ;;  %v1208_v12 = vshll.u32 %v3184_v8, 16 }
  0x4d   : > { %v1207_v15 = vrot.slane %v1205_v11, 1  ;;  %v1210_v17 = vrot.slane %v1208_v12, 2 }
  0x4f   : > { %v1211_v58 = vor.u32 %v1210_v17, %v1207_v15 }
  0x50   : > { %2888 = vmatmul.mubr.msk.bf16.gmra.mrb[24].mxu1 %vm369_vm1, %v552_v23  ;;  %v3186_v23 = vld [vmem:[%s3411_s29 + $0x8] sm:$0xff]  }
  0x51   : > { %2891 = vmatprep.mubr.msk.bf16.mxu1 %vm3243_vm0, %v3242_v1  ;;  %v1212_v63 = vsel %vm1159_vm4, %v1202_v10, %v1211_v58  ;;  %v1405_v27 = vrot.slane %v3186_v23, 2  ;;  %v3208_v58 = vld [vmem:[%s3495_s30 + $0x10] sm:$0xff]  }
  0x52   : > { %2920 = vmatmul.mubr.msk.bf16.gmra.mrb[24].mxu0 %vm369_vm1, %v762_v26  ;;  %v1404_v26 = vrot.slane %v3185_v22, 2  ;;  %v1830_v23 = vshrl.u32 %v3208_v58, 16 }
  0x53   : > { %2959 = vmatprep.mubr.msk.bf16.mxu0 %vm3243_vm0, %v3242_v1  ;;  %v1408_v39 = vsel %vm1403_vm5, %v1405_v27, %v1407_v35 }
  0x54   : > { %v1832_v28 = vrot.slane %v1830_v23, 2 }
  0x58   : > { %2892 = vmatmul.mubr.msk.bf16.gmra.mrb[28].mxu1 %vm369_vm1, %v560_v36  ;;  %v3192_v36 = vld [vmem:[%s3883_s1 + $0xe8] sm:$0xff]  }
  0x59   : > { %2931 = vmatprep.mubr.msk.bf16.mxu1 %vm3243_vm0, %v3242_v1 }
  0x5a   : > { %2960 = vmatmul.mubr.msk.bf16.vlgmr.msra.gmra.mrb[28].mxu0 %vm369_vm1, %v1176_v40  ;;  %v3194_v40 = vld [vmem:[%s3411_s29 + $0x18] sm:$0xff]  }
  0x5b   : > { %3008 = vmatpush3.bf16.msra.mxu0 %v3173_v38  ;;  %2963 = vmatprep.mubr.msk.bf16.mxu0 %vm3243_vm0, %v3242_v1  ;;  %v3207_v38 = vld [vmem:[%s3883_s1 + $0x118] sm:$0xff]   ;;  %v1409_v44 = vrot.slane %v3194_v40, 2 }
  0x5c   : > { %3009 = vmatprep.subr.bf16.mxu0 %v3242_v1 }
  0x5d   : > { %v1410_v47 = vsel %vm1403_vm5, %v1407_v35, %v1409_v44  ;;  %v1412_v57 = vsel %vm1403_vm5, %v1409_v44, %v1411_v51 }
  0x5f   : > { %3010 = vmatpush3.bf16.msra.mxu0 %v3177_v45  ;;  %v3200_v45 = vld [vmem:[%s3883_s1 + $0xf8] sm:$0xff]  }
  0x60   : > { %2932 = vmatmul.mubr.msk.bf16.vlgmr.msra.gmra.mrb[32].mxu1 %vm369_vm1, %v960_v50  ;;  %3011 = vmatprep.subr.bf16.mxu0 %v3242_v1  ;;  %v3204_v50 = vld [vmem:[%s3495_s30 + $0x28] ss:$0 sps:$4 sm:$0xff]  }
  0x61   : > { %2980 = vmatpush3.bf16.msra.mxu1 %v3168_v49  ;;  %2935 = vmatprep.mubr.msk.bf16.mxu1 %vm3243_vm0, %v3242_v1  ;;  %v1618_v49 = vsel %vm1403_vm5, %v1615_v37, %v1617_v46  ;;  %v1619_v54 = vrot.slane %v3204_v50, 2  ;;  %v2061_v37 = vrot.slane %v3214_v33, 3 }
  0x62   : > { %2981 = vmatprep.subr.bf16.mxu1 %v3242_v1  ;;  %2964 = vmatmul.mubr.msk.bf16.gmra.mrb[32].mxu0 %vm369_vm1, %v1185_v53  ;;  %v2246_v53 = vld [vmem:[%s3301_s25] sm:$0xff] }
  0x63   : > { %2967 = vmatprep.mubr.msk.bf16.mxu0 %vm3243_vm0, %v3242_v1  ;;  %3012 = vmatpush3.bf16.msra.mxu0 %v3181_v56  ;;  %v3205_v56 = vld [vmem:[%s3495_s30] sm:$0xff]   ;;  %v1620_v62 = vsel %vm1403_vm5, %v1617_v46, %v1619_v54 }
  0x64   : > { %3013 = vmatprep.subr.bf16.mxu0 %v3242_v1  ;;  %2258 = vperm.xlu0 %3127, %v2246_v53   ;;  %v1816_v5 = vshll.u32 %v3205_v56, 16  ;;  %v3217_v53 = vld [vmem:[%s3495_s30 + $0x28] ss:$0 sps:$4 sm:$0xff]  }
  0x65   : > { %2982 = vmatpush3.bf16.msra.mxu1 %v3172_v59  ;;  %v3206_v59 = vld [vmem:[%s3495_s30 + $0x8] sm:$0xff]  }
  0x66   : > { %2983 = vmatprep.subr.bf16.mxu1 %v3242_v1  ;;  %v1821_v7 = vshrl.u32 %v3206_v59, 16  ;;  %v1824_v8 = vshll.u32 %v3206_v59, 16 }
  0x67   : > { %3014 = vmatpush3.bf16.msra.mxu0 %v3187_v0  ;;  %v3209_v0 = vld [vmem:[%s3495_s30] sm:$0xff]  }
  0x68   : > { %2936 = vmatmul.mubr.msk.bf16.gmra.mrb[36].mxu1 %vm369_vm1, %v962_v2  ;;  %3063 = vmatprep.subr.bf16.mxu0 %v3242_v1  ;;  %v3210_v2 = vld [vmem:[%s3495_s30 + $0x8] sm:$0xff]   ;;  %v2056_v10 = vrot.slane %v3209_v0, 3  ;;  %v1823_v15 = vrot.slane %v1821_v7, 2  ;;  %v1826_v17 = vrot.slane %v1824_v8, 3 }
  0x69   : > { %2939 = vmatprep.mubr.msk.bf16.mxu1 %vm3243_vm0, %v3242_v1  ;;  %2984 = vmatpush3.bf16.msra.mxu1 %v3176_v3  ;;  %v1813_v3 = vshrl.u32 %v3205_v56, 16  ;;  %v2057_v11 = vrot.slane %v3210_v2, 3 }
  0x6a   : > { %2968 = vmatmul.mubr.msk.bf16.gmra.mrb[36].mxu0 %vm369_vm1, %v1194_v4  ;;  %2985 = vmatprep.subr.bf16.mxu1 %v3242_v1  ;;  %v1413_v4 = vrot.slane %v3202_v55, 2  ;;  %v1827_v22 = vor.u32 %v1826_v17, %v1823_v15 }
  0x6b   : > { %2971 = vmatprep.mubr.msk.bf16.mxu0 %vm3243_vm0, %v3242_v1  ;;  %2263 = vperm.xlu0 %3127, %v2247_v60   ;;  %v1815_v12 = vrot.slane %v1813_v3, 2  ;;  %v2058_v19 = vsel %vm2055_vm6, %v2056_v10, %v2057_v11 }
  0x6d   : > { %2986 = vmatpush3.bf16.msra.mxu1 %v3180_v9  ;;  %v2249_v9 = vld [vmem:[%s3301_s25 + $0x18] sm:$0xff] }
  0x6e   : > { %3035 = vmatprep.subr.bf16.mxu1 %v3242_v1  ;;  %2273 = vperm.xlu1 %3128, %v2249_v9  }
  0x6f   : > { %2278 = vperm.xlu0 %3127, %v2250_v18  }
  0x70   : > { %2940 = vmatmul.mubr.msk.bf16.gmra.mrb[40].mxu1 %vm369_vm1, %v964_v13  ;;  %v1414_v13 = vsel %vm1403_vm5, %v1411_v51, %v1413_v4  ;;  %v3215_v51 = vld [vmem:[%s3495_s30 + $0x28] ss:$0 sps:$4 sm:$0xff]  }
  0x71   : > { %2943 = vmatprep.mubr.msk.bf16.mxu1 %vm3243_vm0, %v3242_v1  ;;  %v1857_v55 = vshrl.u32 %v3215_v51, 16  ;;  %v1860_v56 = vshll.u32 %v3215_v51, 16 }
  0x72   : > { %2972 = vmatmul.mubr.msk.bf16.gmra.mrb[40].mxu0 %vm369_vm1, %v1203_v14  ;;  %v1818_v14 = vrot.slane %v1816_v5, 3 }
  0x73   : > { %2975 = vmatprep.mubr.msk.bf16.mxu0 %vm3243_vm0, %v3242_v1  ;;  %2288 = vperm.xlu0 %3127, %v2252_v25   ;;  %v1859_v60 = vrot.slane %v1857_v55, 2  ;;  %v1862_v61 = vrot.slane %v1860_v56, 3 }
  0x74   : > { %v1819_v21 = vor.u32 %v1818_v14, %v1815_v12 }
  0x75   : > { %v1863_v0 = vor.u32 %v1862_v61, %v1859_v60 }
  0x77   : > { %2298 = vperm.xlu0 %3127, %v2254_v31  }
  0x78   : > { %2944 = vmatmul.mubr.msk.bf16.gmra.mrb[44].mxu1 %vm369_vm1, %v3477_v6  ;;  %v3193_v6 = vld [vmem:[%s3883_s1 + $0x100] sm:$0xff]  }
  0x79   : > { %2947 = vmatprep.mubr.msk.bf16.mxu1 %vm3243_vm0, %v3242_v1 }
  0x7a   : > { %2976 = vmatmul.mubr.msk.bf16.gmra.mrb[44].mxu0 %vm369_vm1, %v1212_v63  ;;  %v2251_v63 = vld [vmem:[%s3301_s25 + $0x28] sm:$0xff] }
  0x7b   : > { %3015 = vmatprep.mubr.msk.bf16.mxu0 %vm3243_vm0, %v3242_v1  ;;  %2283 = vperm.xlu1 %3128, %v2251_v63  }
  0x80   : > { %2948 = vmatmul.mubr.msk.bf16.gmra.mrb[48].mxu1 %vm369_vm1, %v3488_v16  ;;  %v1406_v16 = vsel %vm1403_vm5, %v1404_v26, %v1405_v27  ;;  %v2059_v26 = vrot.slane %v3212_v20, 3  ;;  %v1828_v27 = vsel %vm1811_vm7, %v1819_v21, %v1827_v22 }
  0x81   : > { %2987 = vmatprep.mubr.msk.bf16.mxu1 %vm3243_vm0, %v3242_v1 }
  0x82   : > { %3016 = vmatmul.mubr.msk.bf16.vlgmr.msra.gmra.mrb[48].mxu0 %vm369_vm1, %v1612_v24  ;;  %v1833_v24 = vshll.u32 %v3208_v58, 16 }
  0x83   : > { %3064 = vmatpush3.bf16.msra.mxu0 %v3193_v6  ;;  %3019 = vmatprep.mubr.msk.bf16.mxu0 %vm3243_vm0, %v3242_v1  ;;  %v2253_v6 = vld [vmem:[%s3301_s25 + $0x38] sm:$0xff] }
  0x84   : > { %3065 = vmatprep.subr.bf16.mxu0 %v3242_v1  ;;  %2293 = vperm.xlu1 %3128, %v2253_v6  }
  0x87   : > { %3066 = vmatpush3.bf16.msra.mxu0 %v3197_v29  ;;  %v1835_v29 = vrot.slane %v1833_v24, 3 }
  0x88   : > { %2988 = vmatmul.mubr.msk.bf16.vlgmr.msra.gmra.mrb[52].mxu1 %vm369_vm1, %v1406_v16  ;;  %3067 = vmatprep.subr.bf16.mxu0 %v3242_v1  ;;  %v3211_v16 = vld [vmem:[%s3495_s30 + $0x18] sm:$0xff]  }
  0x89   : > { %3036 = vmatpush3.bf16.msra.mxu1 %v3188_v30  ;;  %2991 = vmatprep.mubr.msk.bf16.mxu1 %vm3243_vm0, %v3242_v1  ;;  %v2255_v30 = vld [vmem:[%s3301_s25 + $0x48] sm:$0xff]  ;;  %v1839_v35 = vshrl.u32 %v3211_v16, 16 }
  0x8a   : > { %3037 = vmatprep.subr.bf16.mxu1 %v3242_v1  ;;  %3020 = vmatmul.mubr.msk.bf16.gmra.mrb[52].mxu0 %vm369_vm1, %v1614_v32  ;;  %v2060_v32 = vsel %vm2055_vm6, %v2057_v11, %v2059_v26 }
  0x8b   : > { %3023 = vmatprep.mubr.msk.bf16.mxu0 %vm3243_vm0, %v3242_v1  ;;  %3068 = vmatpush3.bf16.msra.mxu0 %v3201_v34  ;;  %v1836_v34 = vor.u32 %v1835_v29, %v1832_v28 }
  0x8c   : > { %3069 = vmatprep.subr.bf16.mxu0 %v3242_v1  ;;  %2303 = vperm.xlu1 %3128, %v2255_v30  }
  0x8d   : > { %3038 = vmatpush3.bf16.msra.mxu1 %v3192_v36  ;;  %v1842_v36 = vshll.u32 %v3211_v16, 16 }
  0x8e   : > { %3039 = vmatprep.subr.bf16.mxu1 %v3242_v1 }
  0x8f   : > { %3070 = vmatpush3.bf16.msra.mxu0 %v3207_v38  ;;  %v1837_v38 = vsel %vm1811_vm7, %v1827_v22, %v1836_v34  ;;  %v1844_v40 = vrot.slane %v1842_v36, 3 }
  0x90   : > { %2992 = vmatmul.mubr.msk.bf16.gmra.mrb[56].mxu1 %vm369_vm1, %v1408_v39  ;;  %v1841_v39 = vrot.slane %v1839_v35, 2 }
  0x91   : > { %2995 = vmatprep.mubr.msk.bf16.mxu1 %vm3243_vm0, %v3242_v1  ;;  %3040 = vmatpush3.bf16.msra.mxu1 %v3196_v41  ;;  %v3213_v41 = vld [vmem:[%s3495_s30 + $0x20] sm:$0xff]  }
  0x92   : > { %3024 = vmatmul.mubr.msk.bf16.gmra.mrb[56].mxu0 %vm369_vm1, %v1616_v42  ;;  %3041 = vmatprep.subr.bf16.mxu1 %v3242_v1  ;;  %v2062_v42 = vsel %vm2055_vm6, %v2059_v26, %v2061_v37  ;;  %v1845_v44 = vor.u32 %v1844_v40, %v1841_v39  ;;  %v1851_v46 = vshll.u32 %v3213_v41, 16 }
  0x93   : > { %3027 = vmatprep.mubr.msk.bf16.mxu0 %vm3243_vm0, %v3242_v1 }
  0x94   : > { %v1846_v48 = vsel %vm1811_vm7, %v1836_v34, %v1845_v44  ;;  %v1853_v50 = vrot.slane %v1851_v46, 3 }
  0x95   : > { %3042 = vmatpush3.bf16.msra.mxu1 %v3200_v45  ;;  %v1848_v45 = vshrl.u32 %v3213_v41, 16 }
  0x98   : > { %2996 = vmatmul.mubr.msk.bf16.gmra.mrb[60].mxu1 %vm369_vm1, %v1410_v47  ;;  %v2063_v47 = vrot.slane %v3216_v43, 3 }
  0x99   : > { %2999 = vmatprep.mubr.msk.bf16.mxu1 %vm3243_vm0, %v3242_v1 }
  0x9a   : > { %3028 = vmatmul.mubr.msk.bf16.gmra.mrb[60].mxu0 %vm369_vm1, %v1618_v49  ;;  %v1850_v49 = vrot.slane %v1848_v45, 2  ;;  %v2064_v52 = vsel %vm2055_vm6, %v2061_v37, %v2063_v47 }
  0x9b   : > { %3031 = vmatprep.mubr.msk.bf16.mxu0 %vm3243_vm0, %v3242_v1 }
  0x9c   : > { %v1854_v54 = vor.u32 %v1853_v50, %v1850_v49 }
  0x9e   : > { %v1855_v59 = vsel %vm1811_vm7, %v1845_v44, %v1854_v54  ;;  %v1864_v2 = vsel %vm1811_vm7, %v1854_v54, %v1863_v0 }
  0xa0   : > { %3000 = vmatmul.mubr.msk.bf16.gmra.mrb[64].mxu1 %vm369_vm1, %v1412_v57  ;;  %v2065_v57 = vrot.slane %v3217_v53, 3 }
  0xa1   : > { %3003 = vmatprep.mubr.msk.bf16.mxu1 %vm3243_vm0, %v3242_v1 }
  0xa2   : > { %3032 = vmatmul.mubr.msk.bf16.gmra.mrb[64].mxu0 %vm369_vm1, %v1620_v62  ;;  %v2066_v62 = vsel %vm2055_vm6, %v2063_v47, %v2065_v57 }
  0xa3   : > { %3071 = vmatprep.mubr.msk.bf16.mxu0 %vm3243_vm0, %v3242_v1 }
  0xa8   : > { %3004 = vmatmul.mubr.msk.bf16.gmra.mrb[68].mxu1 %vm369_vm1, %v1414_v13 }
  0xa9   : > { %3043 = vmatprep.mubr.msk.bf16.mxu1 %vm3243_vm0, %v3242_v1 }
  0xaa   : > { %3072 = vmatmul.mubr.msk.bf16.vlgmr.msra.gmra.mrb[68].mxu0 %vm369_vm1, %v2058_v19 }
  0xab   : > { %3075 = vmatprep.mubr.msk.bf16.mxu0 %vm3243_vm0, %v3242_v1 }
  0xb0   : > { %3044 = vmatmul.mubr.msk.bf16.vlgmr.msra.gmra.mrb[72].mxu1 %vm369_vm1, %v1828_v27 }
  0xb1   : > { %3047 = vmatprep.mubr.msk.bf16.mxu1 %vm3243_vm0, %v3242_v1 }
  0xb2   : > { %3076 = vmatmul.mubr.msk.bf16.gmra.mrb[72].mxu0 %vm369_vm1, %v2060_v32 }
  0xb3   : > { %3079 = vmatprep.mubr.msk.bf16.mxu0 %vm3243_vm0, %v3242_v1 }
  0xb8   : > { %3048 = vmatmul.mubr.msk.bf16.gmra.mrb[76].mxu1 %vm369_vm1, %v1837_v38 }
  0xb9   : > { %3051 = vmatprep.mubr.msk.bf16.mxu1 %vm3243_vm0, %v3242_v1 }
  0xba   : > { %3080 = vmatmul.mubr.msk.bf16.gmra.mrb[76].mxu0 %vm369_vm1, %v2062_v42 }
  0xbb   : > { %3083 = vmatprep.mubr.msk.bf16.mxu0 %vm3243_vm0, %v3242_v1 }
  0xc0   : > { %3052 = vmatmul.mubr.msk.bf16.gmra.mrb[80].mxu1 %vm369_vm1, %v1846_v48 }
  0xc1   : > { %3055 = vmatprep.mubr.msk.bf16.mxu1 %vm3243_vm0, %v3242_v1 }
  0xc2   : > { %3084 = vmatmul.mubr.msk.bf16.gmra.mrb[80].mxu0 %vm369_vm1, %v2064_v52 }
  0xc3   : > { %3087 = vmatprep.mubr.msk.bf16.mxu0 %vm3243_vm0, %v3242_v1 }
  0xc8   : > { %3056 = vmatmul.mubr.msk.bf16.gmra.mrb[84].mxu1 %vm369_vm1, %v1855_v59 }
  0xc9   : > { %3059 = vmatprep.mubr.msk.bf16.mxu1 %vm3243_vm0, %v3242_v1 }
  0xca   : > { %3088 = vmatmul.mubr.msk.bf16.gmra.mrb[84].mxu0 %vm369_vm1, %v2066_v62 }
  0xd0   : > { %3060 = vmatmul.mubr.msk.bf16.gmra.mrb[88].mxu1 %vm369_vm1, %v1864_v2 }
  0xf3   : > { %v435_v3 = vpop.f32.mrb[0].mxu1 }
  0xf4   : > { %462 = vst.msk [vmem:[#allocation2 + $0x20] sm:$0xff] %vm369_vm1, %v435_v3  ;;  %v2857_v4 = vpop.f32.mrb[1].mxu1 }
  0xf5   : > { %v438_v5 = vpop.f32.mrb[2].mxu1  ;;  %v419_v7 = vpop.f32.mrb[0].mxu0 }
  0xf6   : > { %463 = vst.msk [vmem:[#allocation2 + $0x28] sm:$0xff] %vm369_vm1, %v438_v5  ;;  %v2858_v8 = vpop.f32.mrb[3].mxu1  ;;  %458 = vst.msk [vmem:[#allocation2] sm:$0xff] %vm369_vm1, %v419_v7  ;;  %v2849_v9 = vpop.f32.mrb[1].mxu0 }
  0xf7   : > { %v422_v1 = vpop.f32.mrb[2].mxu0 }
  0xf8   : > { %459 = vst.msk [vmem:[#allocation2 + $0x8] sm:$0xff] %vm369_vm1, %v422_v1  ;;  %v2850_v10 = vpop.f32.mrb[3].mxu0 }
  0xfb   : > { %v443_v11 = vpop.f32.mrb[4].mxu1  ;;  %v677_v53 = vld [vmem:[#allocation2 + $0x20] sm:$0xff] }
  0xfc   : > { %464 = vst.msk [vmem:[#allocation2 + $0x30] sm:$0xff] %vm369_vm1, %v443_v11  ;;  %v2861_v12 = vpop.f32.mrb[5].mxu1 }
  0xfd   : > { %v446_v13 = vpop.f32.mrb[6].mxu1  ;;  %v427_v14 = vpop.f32.mrb[4].mxu0  ;;  %v673_v25 = vld [vmem:[#allocation2] sm:$0xff]  ;;  %v678_v59 = vld [vmem:[#allocation2 + $0x28] sm:$0xff] }
  0xfe   : > { %465 = vst.msk [vmem:[#allocation2 + $0x38] sm:$0xff] %vm369_vm1, %v446_v13  ;;  %v2862_v15 = vpop.f32.mrb[7].mxu1  ;;  %460 = vst.msk [vmem:[#allocation2 + $0x10] sm:$0xff] %vm369_vm1, %v427_v14  ;;  %v2853_v17 = vpop.f32.mrb[5].mxu0 }
  0xff   : > { %v430_v58 = vpop.f32.mrb[6].mxu0  ;;  %v674_v27 = vld [vmem:[#allocation2 + $0x8] sm:$0xff] }
 0x100   : > { %461 = vst.msk [vmem:[#allocation2 + $0x18] sm:$0xff] %vm369_vm1, %v430_v58  ;;  %v2854_v63 = vpop.f32.mrb[7].mxu0 }
 0x103   : > { %v451_v18 = vpop.f32.mrb[8].mxu1  ;;  %v679_v9 = vld [vmem:[#allocation2 + $0x30] sm:$0xff] }
 0x104   : > { %466 = vst.msk [vmem:[#allocation2 + $0x40] sm:$0xff] %vm369_vm1, %v451_v18  ;;  %v2865_v19 = vpop.f32.mrb[9].mxu1 }
 0x105   : > { %v454_v20 = vpop.f32.mrb[10].mxu1  ;;  %v836_v21 = vpop.f32.mrb[8].mxu0  ;;  %v675_v36 = vld [vmem:[#allocation2 + $0x10] sm:$0xff]  ;;  %v680_v13 = vld [vmem:[#allocation2 + $0x38] sm:$0xff] }
 0x106   : > { %467 = vst.msk [vmem:[#allocation2 + $0x48] sm:$0xff] %vm369_vm1, %v454_v20  ;;  %v2866_v22 = vpop.f32.mrb[11].mxu1  ;;  %v2905_v23 = vpop.f32.mrb[9].mxu0 }
 0x107   : > { %v839_v24 = vpop.f32.mrb[10].mxu0  ;;  %v676_v38 = vld [vmem:[#allocation2 + $0x18] sm:$0xff] }
 0x108   : > { %v2906_v6 = vpop.f32.mrb[11].mxu0 }
 0x10b   : > { %v634_v26 = vpop.f32.mrb[12].mxu1  ;;  %v681_v23 = vld [vmem:[#allocation2 + $0x40] sm:$0xff] }
 0x10c   : > { %v683_v28 = vadd.f32 %v673_v25, %v634_v26  ;;  %v2877_v29 = vpop.f32.mrb[13].mxu1 }
 0x10d   : > { %v637_v16 = vpop.f32.mrb[14].mxu1  ;;  %v844_v30 = vpop.f32.mrb[12].mxu0 }
 0x10e   : > { %693 = vst.msk [vmem:[#allocation2] sm:$0xff] %vm369_vm1, %v683_v28  ;;  %v684_v31 = vadd.f32 %v674_v27, %v637_v16  ;;  %v2878_v32 = vpop.f32.mrb[15].mxu1  ;;  %v2909_v33 = vpop.f32.mrb[13].mxu0  ;;  %v682_v27 = vld [vmem:[#allocation2 + $0x48] sm:$0xff] }
 0x10f   : > { %v847_v34 = vpop.f32.mrb[14].mxu0 }
 0x110   : > { %694 = vst.msk [vmem:[#allocation2 + $0x8] sm:$0xff] %vm369_vm1, %v684_v31  ;;  %v2910_v35 = vpop.f32.mrb[15].mxu0 }
 0x113   : > { %v642_v37 = vpop.f32.mrb[16].mxu1 }
 0x114   : > { %v685_v39 = vadd.f32 %v675_v36, %v642_v37  ;;  %v2881_v40 = vpop.f32.mrb[17].mxu1 }
 0x115   : > { %v875_v41 = vld [vmem:[#allocation2] sm:$0xff]  ;;  %v645_v42 = vpop.f32.mrb[18].mxu1  ;;  %v852_v43 = vpop.f32.mrb[16].mxu0 }
 0x116   : > { %695 = vst.msk [vmem:[#allocation2 + $0x10] sm:$0xff] %vm369_vm1, %v685_v39  ;;  %v885_v44 = vadd.f32 %v875_v41, %v836_v21  ;;  %v686_v45 = vadd.f32 %v676_v38, %v645_v42  ;;  %v2882_v46 = vpop.f32.mrb[19].mxu1  ;;  %v2913_v47 = vpop.f32.mrb[17].mxu0 }
 0x117   : > { %v876_v48 = vld [vmem:[#allocation2 + $0x8] sm:$0xff]  ;;  %v855_v49 = vpop.f32.mrb[18].mxu0 }
 0x118   : > { %895 = vst.msk [vmem:[#allocation2] sm:$0xff] %vm369_vm1, %v885_v44  ;;  %696 = vst.msk [vmem:[#allocation2 + $0x18] sm:$0xff] %vm369_vm1, %v686_v45  ;;  %v886_v50 = vadd.f32 %v876_v48, %v839_v24  ;;  %v2914_v51 = vpop.f32.mrb[19].mxu0 }
 0x11a   : > { %896 = vst.msk [vmem:[#allocation2 + $0x8] sm:$0xff] %vm369_vm1, %v886_v50 }
 0x11b   : > { %v650_v52 = vpop.f32.mrb[20].mxu1 }
 0x11c   : > { %v687_v54 = vadd.f32 %v677_v53, %v650_v52  ;;  %v2885_v55 = vpop.f32.mrb[21].mxu1 }
 0x11d   : > { %v877_v56 = vld [vmem:[#allocation2 + $0x10] sm:$0xff]  ;;  %v653_v57 = vpop.f32.mrb[22].mxu1  ;;  %v860_v60 = vpop.f32.mrb[20].mxu0 }
 0x11e   : > { %697 = vst.msk [vmem:[#allocation2 + $0x20] sm:$0xff] %vm369_vm1, %v687_v54  ;;  %v887_v61 = vadd.f32 %v877_v56, %v844_v30  ;;  %v688_v62 = vadd.f32 %v678_v59, %v653_v57  ;;  %v2886_v0 = vpop.f32.mrb[23].mxu1  ;;  %v2917_v2 = vpop.f32.mrb[21].mxu0 }
 0x11f   : > { %v878_v3 = vld [vmem:[#allocation2 + $0x18] sm:$0xff]  ;;  %v863_v4 = vpop.f32.mrb[22].mxu0  ;;  %v1081_v37 = vld [vmem:[#allocation2] sm:$0xff] }
 0x120   : > { %897 = vst.msk [vmem:[#allocation2 + $0x10] sm:$0xff] %vm369_vm1, %v887_v61  ;;  %698 = vst.msk [vmem:[#allocation2 + $0x28] sm:$0xff] %vm369_vm1, %v688_v62  ;;  %v888_v5 = vadd.f32 %v878_v3, %v847_v34  ;;  %v2918_v7 = vpop.f32.mrb[23].mxu0 }
 0x121   : > { %v1082_v42 = vld [vmem:[#allocation2 + $0x8] sm:$0xff] }
 0x122   : > { %898 = vst.msk [vmem:[#allocation2 + $0x18] sm:$0xff] %vm369_vm1, %v888_v5 }
 0x123   : > { %v658_v8 = vpop.f32.mrb[24].mxu1 }
 0x124   : > { %v689_v1 = vadd.f32 %v679_v9, %v658_v8  ;;  %v2889_v10 = vpop.f32.mrb[25].mxu1 }
 0x125   : > { %v879_v11 = vld [vmem:[#allocation2 + $0x20] sm:$0xff]  ;;  %v661_v12 = vpop.f32.mrb[26].mxu1  ;;  %v868_v14 = vpop.f32.mrb[24].mxu0 }
 0x126   : > { %699 = vst.msk [vmem:[#allocation2 + $0x30] sm:$0xff] %vm369_vm1, %v689_v1  ;;  %v889_v15 = vadd.f32 %v879_v11, %v852_v43  ;;  %v690_v17 = vadd.f32 %v680_v13, %v661_v12  ;;  %v2890_v58 = vpop.f32.mrb[27].mxu1  ;;  %v2921_v63 = vpop.f32.mrb[25].mxu0 }
 0x127   : > { %v880_v18 = vld [vmem:[#allocation2 + $0x28] sm:$0xff]  ;;  %v871_v19 = vpop.f32.mrb[26].mxu0  ;;  %v1083_v53 = vld [vmem:[#allocation2 + $0x10] sm:$0xff] }
 0x128   : > { %899 = vst.msk [vmem:[#allocation2 + $0x20] sm:$0xff] %vm369_vm1, %v889_v15  ;;  %700 = vst.msk [vmem:[#allocation2 + $0x38] sm:$0xff] %vm369_vm1, %v690_v17  ;;  %v890_v20 = vadd.f32 %v880_v18, %v855_v49  ;;  %v2922_v21 = vpop.f32.mrb[27].mxu0 }
 0x129   : > { %v1084_v59 = vld [vmem:[#allocation2 + $0x18] sm:$0xff] }
 0x12a   : > { %900 = vst.msk [vmem:[#allocation2 + $0x28] sm:$0xff] %vm369_vm1, %v890_v20 }
 0x12b   : > { %v666_v22 = vpop.f32.mrb[28].mxu1 }
 0x12c   : > { %v691_v24 = vadd.f32 %v681_v23, %v666_v22  ;;  %v2893_v6 = vpop.f32.mrb[29].mxu1 }
 0x12d   : > { %v881_v25 = vld [vmem:[#allocation2 + $0x30] sm:$0xff]  ;;  %v669_v26 = vpop.f32.mrb[30].mxu1  ;;  %v1286_v28 = vpop.f32.mrb[28].mxu0 }
 0x12e   : > { %701 = vst.msk [vmem:[#allocation2 + $0x40] sm:$0xff] %vm369_vm1, %v691_v24  ;;  %v891_v29 = vadd.f32 %v881_v25, %v860_v60  ;;  %v692_v16 = vadd.f32 %v682_v27, %v669_v26  ;;  %v2894_v30 = vpop.f32.mrb[31].mxu1  ;;  %v2961_v31 = vpop.f32.mrb[29].mxu0 }
 0x12f   : > { %v882_v32 = vld [vmem:[#allocation2 + $0x38] sm:$0xff]  ;;  %v1289_v33 = vpop.f32.mrb[30].mxu0  ;;  %v1085_v9 = vld [vmem:[#allocation2 + $0x20] sm:$0xff] }
 0x130   : > { %901 = vst.msk [vmem:[#allocation2 + $0x30] sm:$0xff] %vm369_vm1, %v891_v29  ;;  %702 = vst.msk [vmem:[#allocation2 + $0x48] sm:$0xff] %vm369_vm1, %v692_v16  ;;  %v892_v34 = vadd.f32 %v882_v32, %v863_v4  ;;  %v2962_v35 = vpop.f32.mrb[31].mxu0 }
 0x131   : > { %v1086_v13 = vld [vmem:[#allocation2 + $0x28] sm:$0xff] }
 0x132   : > { %902 = vst.msk [vmem:[#allocation2 + $0x38] sm:$0xff] %vm369_vm1, %v892_v34 }
 0x133   : > { %v1042_v36 = vpop.f32.mrb[32].mxu1 }
 0x134   : > { %v1091_v38 = vadd.f32 %v1081_v37, %v1042_v36  ;;  %v2933_v39 = vpop.f32.mrb[33].mxu1 }
 0x135   : > { %v883_v40 = vld [vmem:[#allocation2 + $0x40] sm:$0xff]  ;;  %v1045_v41 = vpop.f32.mrb[34].mxu1  ;;  %v1294_v43 = vpop.f32.mrb[32].mxu0 }
 0x136   : > { %v893_v44 = vadd.f32 %v883_v40, %v868_v14  ;;  %1101 = vst.msk [vmem:[#allocation2] sm:$0xff] %vm369_vm1, %v1091_v38  ;;  %v1092_v45 = vadd.f32 %v1082_v42, %v1045_v41  ;;  %v2934_v46 = vpop.f32.mrb[35].mxu1  ;;  %v2965_v47 = vpop.f32.mrb[33].mxu0 }
 0x137   : > { %v884_v48 = vld [vmem:[#allocation2 + $0x48] sm:$0xff]  ;;  %v1297_v49 = vpop.f32.mrb[34].mxu0  ;;  %v1087_v23 = vld [vmem:[#allocation2 + $0x30] sm:$0xff] }
 0x138   : > { %903 = vst.msk [vmem:[#allocation2 + $0x40] sm:$0xff] %vm369_vm1, %v893_v44  ;;  %v894_v50 = vadd.f32 %v884_v48, %v871_v19  ;;  %1102 = vst.msk [vmem:[#allocation2 + $0x8] sm:$0xff] %vm369_vm1, %v1092_v45  ;;  %v2966_v51 = vpop.f32.mrb[35].mxu0 }
 0x139   : > { %v1088_v27 = vld [vmem:[#allocation2 + $0x38] sm:$0xff] }
 0x13a   : > { %904 = vst.msk [vmem:[#allocation2 + $0x48] sm:$0xff] %vm369_vm1, %v894_v50 }
 0x13b   : > { %v1050_v52 = vpop.f32.mrb[36].mxu1 }
 0x13c   : > { %v1093_v54 = vadd.f32 %v1083_v53, %v1050_v52  ;;  %v2937_v55 = vpop.f32.mrb[37].mxu1 }
 0x13d   : > { %v1325_v56 = vld [vmem:[#allocation2] sm:$0xff]  ;;  %v1053_v57 = vpop.f32.mrb[38].mxu1  ;;  %v1302_v60 = vpop.f32.mrb[36].mxu0 }
 0x13e   : > { %1103 = vst.msk [vmem:[#allocation2 + $0x10] sm:$0xff] %vm369_vm1, %v1093_v54  ;;  %v1335_v61 = vadd.f32 %v1325_v56, %v1286_v28  ;;  %v1094_v62 = vadd.f32 %v1084_v59, %v1053_v57  ;;  %v2938_v0 = vpop.f32.mrb[39].mxu1  ;;  %v2969_v2 = vpop.f32.mrb[37].mxu0 }
 0x13f   : > { %v1326_v3 = vld [vmem:[#allocation2 + $0x8] sm:$0xff]  ;;  %v1305_v4 = vpop.f32.mrb[38].mxu0  ;;  %v1089_v37 = vld [vmem:[#allocation2 + $0x40] sm:$0xff] }
 0x140   : > { %1345 = vst.msk [vmem:[#allocation2] sm:$0xff] %vm369_vm1, %v1335_v61  ;;  %1104 = vst.msk [vmem:[#allocation2 + $0x18] sm:$0xff] %vm369_vm1, %v1094_v62  ;;  %v1336_v5 = vadd.f32 %v1326_v3, %v1289_v33  ;;  %v2970_v7 = vpop.f32.mrb[39].mxu0 }
 0x141   : > { %v1090_v42 = vld [vmem:[#allocation2 + $0x48] sm:$0xff] }
 0x142   : > { %1346 = vst.msk [vmem:[#allocation2 + $0x8] sm:$0xff] %vm369_vm1, %v1336_v5 }
 0x143   : > { %v1058_v8 = vpop.f32.mrb[40].mxu1 }
 0x144   : > { %v1095_v1 = vadd.f32 %v1085_v9, %v1058_v8  ;;  %v2941_v10 = vpop.f32.mrb[41].mxu1 }
 0x145   : > { %v1327_v11 = vld [vmem:[#allocation2 + $0x10] sm:$0xff]  ;;  %v1061_v12 = vpop.f32.mrb[42].mxu1  ;;  %v1310_v14 = vpop.f32.mrb[40].mxu0 }
 0x146   : > { %1105 = vst.msk [vmem:[#allocation2 + $0x20] sm:$0xff] %vm369_vm1, %v1095_v1  ;;  %v1337_v15 = vadd.f32 %v1327_v11, %v1294_v43  ;;  %v1096_v17 = vadd.f32 %v1086_v13, %v1061_v12  ;;  %v2942_v58 = vpop.f32.mrb[43].mxu1  ;;  %v2973_v63 = vpop.f32.mrb[41].mxu0 }
 0x147   : > { %v1328_v18 = vld [vmem:[#allocation2 + $0x18] sm:$0xff]  ;;  %v1313_v19 = vpop.f32.mrb[42].mxu0  ;;  %v1527_v53 = vld [vmem:[#allocation2] sm:$0xff] }
 0x148   : > { %1347 = vst.msk [vmem:[#allocation2 + $0x10] sm:$0xff] %vm369_vm1, %v1337_v15  ;;  %1106 = vst.msk [vmem:[#allocation2 + $0x28] sm:$0xff] %vm369_vm1, %v1096_v17  ;;  %v1338_v20 = vadd.f32 %v1328_v18, %v1297_v49  ;;  %v2974_v21 = vpop.f32.mrb[43].mxu0 }
 0x149   : > { %v1528_v59 = vld [vmem:[#allocation2 + $0x8] sm:$0xff] }
 0x14a   : > { %1348 = vst.msk [vmem:[#allocation2 + $0x18] sm:$0xff] %vm369_vm1, %v1338_v20 }
 0x14b   : > { %v1066_v22 = vpop.f32.mrb[44].mxu1 }
 0x14c   : > { %v1097_v24 = vadd.f32 %v1087_v23, %v1066_v22  ;;  %v2945_v6 = vpop.f32.mrb[45].mxu1 }
 0x14d   : > { %v1329_v25 = vld [vmem:[#allocation2 + $0x20] sm:$0xff]  ;;  %v1069_v26 = vpop.f32.mrb[46].mxu1  ;;  %v1318_v28 = vpop.f32.mrb[44].mxu0 }
 0x14e   : > { %1107 = vst.msk [vmem:[#allocation2 + $0x30] sm:$0xff] %vm369_vm1, %v1097_v24  ;;  %v1339_v29 = vadd.f32 %v1329_v25, %v1302_v60  ;;  %v1098_v16 = vadd.f32 %v1088_v27, %v1069_v26  ;;  %v2946_v30 = vpop.f32.mrb[47].mxu1  ;;  %v2977_v31 = vpop.f32.mrb[45].mxu0 }
 0x14f   : > { %v1330_v32 = vld [vmem:[#allocation2 + $0x28] sm:$0xff]  ;;  %v1321_v33 = vpop.f32.mrb[46].mxu0  ;;  %v1529_v9 = vld [vmem:[#allocation2 + $0x10] sm:$0xff] }
 0x150   : > { %1349 = vst.msk [vmem:[#allocation2 + $0x20] sm:$0xff] %vm369_vm1, %v1339_v29  ;;  %1108 = vst.msk [vmem:[#allocation2 + $0x38] sm:$0xff] %vm369_vm1, %v1098_v16  ;;  %v1340_v34 = vadd.f32 %v1330_v32, %v1305_v4  ;;  %v2978_v35 = vpop.f32.mrb[47].mxu0 }
 0x151   : > { %v1530_v13 = vld [vmem:[#allocation2 + $0x18] sm:$0xff] }
 0x152   : > { %1350 = vst.msk [vmem:[#allocation2 + $0x28] sm:$0xff] %vm369_vm1, %v1340_v34 }
 0x153   : > { %v1074_v36 = vpop.f32.mrb[48].mxu1 }
 0x154   : > { %v1099_v38 = vadd.f32 %v1089_v37, %v1074_v36  ;;  %v2949_v39 = vpop.f32.mrb[49].mxu1 }
 0x155   : > { %v1331_v40 = vld [vmem:[#allocation2 + $0x30] sm:$0xff]  ;;  %v1077_v41 = vpop.f32.mrb[50].mxu1  ;;  %v1694_v43 = vpop.f32.mrb[48].mxu0 }
 0x156   : > { %1109 = vst.msk [vmem:[#allocation2 + $0x40] sm:$0xff] %vm369_vm1, %v1099_v38  ;;  %v1341_v44 = vadd.f32 %v1331_v40, %v1310_v14  ;;  %v1100_v45 = vadd.f32 %v1090_v42, %v1077_v41  ;;  %v2950_v46 = vpop.f32.mrb[51].mxu1  ;;  %v3017_v47 = vpop.f32.mrb[49].mxu0 }
 0x157   : > { %v1332_v48 = vld [vmem:[#allocation2 + $0x38] sm:$0xff]  ;;  %v1697_v49 = vpop.f32.mrb[50].mxu0  ;;  %v1531_v23 = vld [vmem:[#allocation2 + $0x20] sm:$0xff] }
 0x158   : > { %1351 = vst.msk [vmem:[#allocation2 + $0x30] sm:$0xff] %vm369_vm1, %v1341_v44  ;;  %1110 = vst.msk [vmem:[#allocation2 + $0x48] sm:$0xff] %vm369_vm1, %v1100_v45  ;;  %v1342_v50 = vadd.f32 %v1332_v48, %v1313_v19  ;;  %v3018_v51 = vpop.f32.mrb[51].mxu0 }
 0x159   : > { %v1532_v27 = vld [vmem:[#allocation2 + $0x28] sm:$0xff] }
 0x15a   : > { %1352 = vst.msk [vmem:[#allocation2 + $0x38] sm:$0xff] %vm369_vm1, %v1342_v50 }
 0x15b   : > { %v1488_v52 = vpop.f32.mrb[52].mxu1 }
 0x15c   : > { %v1537_v54 = vadd.f32 %v1527_v53, %v1488_v52  ;;  %v2989_v55 = vpop.f32.mrb[53].mxu1 }
 0x15d   : > { %v1333_v56 = vld [vmem:[#allocation2 + $0x40] sm:$0xff]  ;;  %v1491_v57 = vpop.f32.mrb[54].mxu1  ;;  %v1702_v60 = vpop.f32.mrb[52].mxu0 }
 0x15e   : > { %v1343_v61 = vadd.f32 %v1333_v56, %v1318_v28  ;;  %1547 = vst.msk [vmem:[#allocation2] sm:$0xff] %vm369_vm1, %v1537_v54  ;;  %v1538_v62 = vadd.f32 %v1528_v59, %v1491_v57  ;;  %v2990_v0 = vpop.f32.mrb[55].mxu1  ;;  %v3021_v2 = vpop.f32.mrb[53].mxu0 }
 0x15f   : > { %v1334_v3 = vld [vmem:[#allocation2 + $0x48] sm:$0xff]  ;;  %v1705_v4 = vpop.f32.mrb[54].mxu0  ;;  %v1533_v37 = vld [vmem:[#allocation2 + $0x30] sm:$0xff] }
 0x160   : > { %1353 = vst.msk [vmem:[#allocation2 + $0x40] sm:$0xff] %vm369_vm1, %v1343_v61  ;;  %v1344_v5 = vadd.f32 %v1334_v3, %v1321_v33  ;;  %1548 = vst.msk [vmem:[#allocation2 + $0x8] sm:$0xff] %vm369_vm1, %v1538_v62  ;;  %v3022_v7 = vpop.f32.mrb[55].mxu0 }
 0x161   : > { %v1534_v42 = vld [vmem:[#allocation2 + $0x38] sm:$0xff] }
 0x162   : > { %1354 = vst.msk [vmem:[#allocation2 + $0x48] sm:$0xff] %vm369_vm1, %v1344_v5 }
 0x163   : > { %v1496_v8 = vpop.f32.mrb[56].mxu1 }
 0x164   : > { %v1539_v1 = vadd.f32 %v1529_v9, %v1496_v8  ;;  %v2993_v10 = vpop.f32.mrb[57].mxu1 }
 0x165   : > { %v1733_v11 = vld [vmem:[#allocation2] sm:$0xff]  ;;  %v1499_v12 = vpop.f32.mrb[58].mxu1  ;;  %v1710_v14 = vpop.f32.mrb[56].mxu0 }
 0x166   : > { %1549 = vst.msk [vmem:[#allocation2 + $0x10] sm:$0xff] %vm369_vm1, %v1539_v1  ;;  %v1743_v15 = vadd.f32 %v1733_v11, %v1694_v43  ;;  %v1540_v17 = vadd.f32 %v1530_v13, %v1499_v12  ;;  %v2994_v58 = vpop.f32.mrb[59].mxu1  ;;  %v3025_v63 = vpop.f32.mrb[57].mxu0 }
 0x167   : > { %v1734_v18 = vld [vmem:[#allocation2 + $0x8] sm:$0xff]  ;;  %v1713_v19 = vpop.f32.mrb[58].mxu0  ;;  %v1535_v53 = vld [vmem:[#allocation2 + $0x40] sm:$0xff] }
 0x168   : > { %1753 = vst.msk [vmem:[#allocation2] sm:$0xff] %vm369_vm1, %v1743_v15  ;;  %1550 = vst.msk [vmem:[#allocation2 + $0x18] sm:$0xff] %vm369_vm1, %v1540_v17  ;;  %v1744_v20 = vadd.f32 %v1734_v18, %v1697_v49  ;;  %v3026_v21 = vpop.f32.mrb[59].mxu0 }
 0x169   : > { %v1536_v59 = vld [vmem:[#allocation2 + $0x48] sm:$0xff] }
 0x16a   : > { %1754 = vst.msk [vmem:[#allocation2 + $0x8] sm:$0xff] %vm369_vm1, %v1744_v20 }
 0x16b   : > { %v1504_v22 = vpop.f32.mrb[60].mxu1 }
 0x16c   : > { %v1541_v24 = vadd.f32 %v1531_v23, %v1504_v22  ;;  %v2997_v6 = vpop.f32.mrb[61].mxu1 }
 0x16d   : > { %v1735_v25 = vld [vmem:[#allocation2 + $0x10] sm:$0xff]  ;;  %v1507_v26 = vpop.f32.mrb[62].mxu1  ;;  %v1718_v28 = vpop.f32.mrb[60].mxu0 }
 0x16e   : > { %1551 = vst.msk [vmem:[#allocation2 + $0x20] sm:$0xff] %vm369_vm1, %v1541_v24  ;;  %v1745_v29 = vadd.f32 %v1735_v25, %v1702_v60  ;;  %v1542_v16 = vadd.f32 %v1532_v27, %v1507_v26  ;;  %v2998_v30 = vpop.f32.mrb[63].mxu1  ;;  %v3029_v31 = vpop.f32.mrb[61].mxu0 }
 0x16f   : > { %v1736_v32 = vld [vmem:[#allocation2 + $0x18] sm:$0xff]  ;;  %v1721_v33 = vpop.f32.mrb[62].mxu0  ;;  %v1977_v9 = vld [vmem:[#allocation2] sm:$0xff] }
 0x170   : > { %1755 = vst.msk [vmem:[#allocation2 + $0x10] sm:$0xff] %vm369_vm1, %v1745_v29  ;;  %1552 = vst.msk [vmem:[#allocation2 + $0x28] sm:$0xff] %vm369_vm1, %v1542_v16  ;;  %v1746_v34 = vadd.f32 %v1736_v32, %v1705_v4  ;;  %v3030_v35 = vpop.f32.mrb[63].mxu0 }
 0x171   : > { %v1978_v13 = vld [vmem:[#allocation2 + $0x8] sm:$0xff] }
 0x172   : > { %1756 = vst.msk [vmem:[#allocation2 + $0x18] sm:$0xff] %vm369_vm1, %v1746_v34 }
 0x173   : > { %v1512_v36 = vpop.f32.mrb[64].mxu1 }
 0x174   : > { %v1543_v38 = vadd.f32 %v1533_v37, %v1512_v36  ;;  %v3001_v39 = vpop.f32.mrb[65].mxu1 }
 0x175   : > { %v1737_v40 = vld [vmem:[#allocation2 + $0x20] sm:$0xff]  ;;  %v1515_v41 = vpop.f32.mrb[66].mxu1  ;;  %v1726_v43 = vpop.f32.mrb[64].mxu0 }
 0x176   : > { %1553 = vst.msk [vmem:[#allocation2 + $0x30] sm:$0xff] %vm369_vm1, %v1543_v38  ;;  %v1747_v44 = vadd.f32 %v1737_v40, %v1710_v14  ;;  %v1544_v45 = vadd.f32 %v1534_v42, %v1515_v41  ;;  %v3002_v46 = vpop.f32.mrb[67].mxu1  ;;  %v3033_v47 = vpop.f32.mrb[65].mxu0 }
 0x177   : > { %v1738_v48 = vld [vmem:[#allocation2 + $0x28] sm:$0xff]  ;;  %v1729_v49 = vpop.f32.mrb[66].mxu0  ;;  %v1979_v23 = vld [vmem:[#allocation2 + $0x10] sm:$0xff]  ;;  %v2259_v40 = vpop.permute.xlu0 %2258 }
 0x178   : > { %1757 = vst.msk [vmem:[#allocation2 + $0x20] sm:$0xff] %vm369_vm1, %v1747_v44  ;;  %1554 = vst.msk [vmem:[#allocation2 + $0x38] sm:$0xff] %vm369_vm1, %v1544_v45  ;;  %v1748_v50 = vadd.f32 %v1738_v48, %v1713_v19  ;;  %v3034_v51 = vpop.f32.mrb[67].mxu0  ;;  %v3809_v44 = vld [vmem:[%s3884_s2] ss:$0 sm:$0xff] }
 0x179   : > { %v1980_v27 = vld [vmem:[#allocation2 + $0x18] sm:$0xff] }
 0x17a   : > { %1758 = vst.msk [vmem:[#allocation2 + $0x28] sm:$0xff] %vm369_vm1, %v1748_v50 }
 0x17b   : > { %v1520_v52 = vpop.f32.mrb[68].mxu1 }
 0x17c   : > { %v1545_v54 = vadd.f32 %v1535_v53, %v1520_v52  ;;  %v3005_v55 = vpop.f32.mrb[69].mxu1 }
 0x17d   : > { %v1739_v56 = vld [vmem:[#allocation2 + $0x30] sm:$0xff]  ;;  %v1523_v57 = vpop.f32.mrb[70].mxu1  ;;  %v2140_v60 = vpop.f32.mrb[68].mxu0 }
 0x17e   : > { %1555 = vst.msk [vmem:[#allocation2 + $0x40] sm:$0xff] %vm369_vm1, %v1545_v54  ;;  %v1749_v61 = vadd.f32 %v1739_v56, %v1718_v28  ;;  %v1546_v62 = vadd.f32 %v1536_v59, %v1523_v57  ;;  %v3006_v0 = vpop.f32.mrb[71].mxu1  ;;  %v3073_v2 = vpop.f32.mrb[69].mxu0 }
 0x17f   : > { %v1740_v3 = vld [vmem:[#allocation2 + $0x38] sm:$0xff]  ;;  %v2143_v4 = vpop.f32.mrb[70].mxu0  ;;  %v1981_v37 = vld [vmem:[#allocation2 + $0x20] sm:$0xff] }
 0x180   : > { %1759 = vst.msk [vmem:[#allocation2 + $0x30] sm:$0xff] %vm369_vm1, %v1749_v61  ;;  %1556 = vst.msk [vmem:[#allocation2 + $0x48] sm:$0xff] %vm369_vm1, %v1546_v62  ;;  %v1750_v5 = vadd.f32 %v1740_v3, %v1721_v33  ;;  %v3074_v7 = vpop.f32.mrb[71].mxu0  ;;  %v2264_v62 = vpop.permute.xlu0 %2263 }
 0x182   : > { %1760 = vst.msk [vmem:[#allocation2 + $0x38] sm:$0xff] %vm369_vm1, %v1750_v5 }
 0x183   : > { %v1938_v8 = vpop.f32.mrb[72].mxu1 }
 0x184   : > { %v1987_v1 = vadd.f32 %v1977_v9, %v1938_v8  ;;  %v3045_v10 = vpop.f32.mrb[73].mxu1 }
 0x185   : > { %v1741_v11 = vld [vmem:[#allocation2 + $0x40] sm:$0xff]  ;;  %v1941_v12 = vpop.f32.mrb[74].mxu1  ;;  %v2148_v14 = vpop.f32.mrb[72].mxu0 }
 0x186   : > { %v1751_v15 = vadd.f32 %v1741_v11, %v1726_v43  ;;  %1997 = vst.msk [vmem:[#allocation2] sm:$0xff] %vm369_vm1, %v1987_v1  ;;  %v1988_v17 = vadd.f32 %v1978_v13, %v1941_v12  ;;  %v3046_v58 = vpop.f32.mrb[75].mxu1  ;;  %v3077_v63 = vpop.f32.mrb[73].mxu0  ;;  %v1982_v43 = vld [vmem:[#allocation2 + $0x28] sm:$0xff] }
 0x187   : > { %v1742_v18 = vld [vmem:[#allocation2 + $0x48] sm:$0xff]  ;;  %v2151_v19 = vpop.f32.mrb[74].mxu0  ;;  %v1983_v61 = vld [vmem:[#allocation2 + $0x30] sm:$0xff] }
 0x188   : > { %1761 = vst.msk [vmem:[#allocation2 + $0x40] sm:$0xff] %vm369_vm1, %v1751_v15  ;;  %v1752_v20 = vadd.f32 %v1742_v18, %v1729_v49  ;;  %1998 = vst.msk [vmem:[#allocation2 + $0x8] sm:$0xff] %vm369_vm1, %v1988_v17  ;;  %v3078_v21 = vpop.f32.mrb[75].mxu0  ;;  %v2269_v17 = vpop.permute.xlu1 %2268 }
 0x189   : > { %v1984_v8 = vld [vmem:[#allocation2 + $0x38] sm:$0xff] }
 0x18a   : > { %1762 = vst.msk [vmem:[#allocation2 + $0x48] sm:$0xff] %vm369_vm1, %v1752_v20 }
 0x18b   : > { %v1946_v22 = vpop.f32.mrb[76].mxu1 }
 0x18c   : > { %v1989_v24 = vadd.f32 %v1979_v23, %v1946_v22  ;;  %v3049_v6 = vpop.f32.mrb[77].mxu1 }
 0x18d   : > { %v2179_v25 = vld [vmem:[#allocation2] sm:$0xff]  ;;  %v1949_v26 = vpop.f32.mrb[78].mxu1  ;;  %v2156_v28 = vpop.f32.mrb[76].mxu0 }
 0x18e   : > { %1999 = vst.msk [vmem:[#allocation2 + $0x10] sm:$0xff] %vm369_vm1, %v1989_v24  ;;  %v2189_v29 = vadd.f32 %v2179_v25, %v2140_v60  ;;  %v1990_v16 = vadd.f32 %v1980_v27, %v1949_v26  ;;  %v3050_v30 = vpop.f32.mrb[79].mxu1  ;;  %v3081_v31 = vpop.f32.mrb[77].mxu0 }
 0x18f   : > { %v2180_v32 = vld [vmem:[#allocation2 + $0x8] sm:$0xff]  ;;  %v2159_v33 = vpop.f32.mrb[78].mxu0  ;;  %v1985_v25 = vld [vmem:[#allocation2 + $0x40] sm:$0xff] }
 0x190   : > { %2199 = vst.msk [vmem:[#allocation2] sm:$0xff] %vm369_vm1, %v2189_v29  ;;  %2000 = vst.msk [vmem:[#allocation2 + $0x18] sm:$0xff] %vm369_vm1, %v1990_v16  ;;  %v2190_v34 = vadd.f32 %v2180_v32, %v2143_v4  ;;  %v3082_v35 = vpop.f32.mrb[79].mxu0  ;;  %v2274_v16 = vpop.permute.xlu1 %2273 }
 0x191   : > { %v1986_v32 = vld [vmem:[#allocation2 + $0x48] sm:$0xff] }
 0x192   : > { %2200 = vst.msk [vmem:[#allocation2 + $0x8] sm:$0xff] %vm369_vm1, %v2190_v34 }
 0x193   : > { %v1954_v36 = vpop.f32.mrb[80].mxu1 }
 0x194   : > { %v1991_v38 = vadd.f32 %v1981_v37, %v1954_v36  ;;  %v3053_v39 = vpop.f32.mrb[81].mxu1 }
 0x195   : > { %v2181_v41 = vld [vmem:[#allocation2 + $0x10] sm:$0xff]  ;;  %v1957_v42 = vpop.f32.mrb[82].mxu1  ;;  %v3811_v45 = vpop.f32.mrb[80].mxu0 }
 0x196   : > { %2001 = vst.msk [vmem:[#allocation2 + $0x20] sm:$0xff] %vm369_vm1, %v1991_v38  ;;  %v2191_v46 = vadd.f32 %v2181_v41, %v2148_v14  ;;  %v1992_v47 = vadd.f32 %v1982_v43, %v1957_v42  ;;  %v3054_v48 = vpop.f32.mrb[83].mxu1  ;;  %v3085_v49 = vpop.f32.mrb[81].mxu0 }
 0x197   : > { %v2182_v50 = vld [vmem:[#allocation2 + $0x18] sm:$0xff]  ;;  %v2209_v51 = vld [vmem:[#allocation2] sm:$0xff]  ;;  %v3814_v52 = vpop.f32.mrb[82].mxu0 }
 0x198   : > { %2201 = vst.msk [vmem:[#allocation2 + $0x10] sm:$0xff] %vm369_vm1, %v2191_v46  ;;  %2002 = vst.msk [vmem:[#allocation2 + $0x28] sm:$0xff] %vm369_vm1, %v1992_v47  ;;  %v2192_v53 = vadd.f32 %v2182_v50, %v2151_v19  ;;  %v2226_v54 = vadd.f32 %v3809_v44, %v2209_v51  ;;  %v3086_v55 = vpop.f32.mrb[83].mxu0  ;;  %v2279_v47 = vpop.permute.xlu0 %2278 }
 0x199   : > { %v2210_v56 = vld [vmem:[#allocation2 + $0x8] sm:$0xff]  ;;  %v2284_v50 = vpop.permute.xlu1 %2283 }
 0x19a   : > { %2202 = vst.msk [vmem:[#allocation2 + $0x18] sm:$0xff] %vm369_vm1, %v2192_v53  ;;  %v2236_v57 = vmax.f32 %v2226_v54, 0.0  ;;  %v2227_v59 = vadd.f32 %v3809_v44, %v2210_v56 }
 0x19b   : > { %v1962_v60 = vpop.f32.mrb[84].mxu1 }
 0x19c   : > { %v2306_v0 = vmul.f32 %v2259_v40, %v2236_v57  ;;  %v1993_v2 = vadd.f32 %v1983_v61, %v1962_v60  ;;  %v3057_v3 = vpop.f32.mrb[85].mxu1  ;;  %v2237_v4 = vmax.f32 %v2227_v59, 0.0 }
 0x19d   : > { %v2183_v5 = vld [vmem:[#allocation2 + $0x20] sm:$0xff]  ;;  %v1965_v7 = vpop.f32.mrb[86].mxu1  ;;  %v2172_v9 = vpop.f32.mrb[84].mxu0 }
 0x19e   : > { %v2748_v1 = vpack.c.bf16 %v2306_v0, %v2306_v0  ;;  %2003 = vst.msk [vmem:[#allocation2 + $0x30] sm:$0xff] %vm369_vm1, %v1993_v2  ;;  %v2193_v10 = vadd.f32 %v2183_v5, %v2156_v28  ;;  %v2307_v11 = vmul.f32 %v2264_v62, %v2237_v4  ;;  %v1994_v12 = vadd.f32 %v1984_v8, %v1965_v7  ;;  %v3058_v13 = vpop.f32.mrb[87].mxu1  ;;  %v3089_v14 = vpop.f32.mrb[85].mxu0 }
 0x19f   : > { %v2184_v15 = vld [vmem:[#allocation2 + $0x28] sm:$0xff]  ;;  %v2211_v58 = vld [vmem:[#allocation2 + $0x10] sm:$0xff]  ;;  %v2175_v63 = vpop.f32.mrb[86].mxu0  ;;  %v2289_v2 = vpop.permute.xlu0 %2288 }
 0x1a0   : > { %2357 = vst.msk [vmem:[%s3306_s28] sm:$0xf] %vm2356_vm8, %v2748_v1  ;;  %v2749_v18 = vpack.c.bf16 %v2307_v11, %v2307_v11  ;;  %v2194_v19 = vadd.f32 %v2184_v15, %v2159_v33  ;;  %v2228_v20 = vadd.f32 %v3809_v44, %v2211_v58  ;;  %v3090_v21 = vpop.f32.mrb[87].mxu0  ;;  %v2294_v5 = vpop.permute.xlu1 %2293 }
 0x1a1   : > { %2203 = vst.msk [vmem:[#allocation2 + $0x20] sm:$0xff] %vm369_vm1, %v2193_v10  ;;  %2004 = vst.msk [vmem:[#allocation2 + $0x38] sm:$0xff] %vm369_vm1, %v1994_v12  ;;  %v2212_v22 = vld [vmem:[#allocation2 + $0x18] sm:$0xff] }
 0x1a2   : > { %2358 = vst.msk [vmem:[%s3306_s28 + $0x4] sm:$0xf] %vm2356_vm8, %v2749_v18  ;;  %v2238_v23 = vmax.f32 %v2228_v20, 0.0  ;;  %v2229_v24 = vadd.f32 %v3809_v44, %v2212_v22 }
 0x1a3   : > { %2204 = vst.msk [vmem:[#allocation2 + $0x28] sm:$0xff] %vm369_vm1, %v2194_v19  ;;  %v1970_v6 = vpop.f32.mrb[88].mxu1  ;;  %v2299_v14 = vpop.permute.xlu0 %2298 }
 0x1a4   : > { %v2308_v26 = vmul.f32 %v2269_v17, %v2238_v23  ;;  %v2239_v27 = vmax.f32 %v2229_v24, 0.0  ;;  %v1995_v28 = vadd.f32 %v1985_v25, %v1970_v6  ;;  %v3061_v29 = vpop.f32.mrb[89].mxu1  ;;  %v2304_v58 = vpop.permute.xlu1 %2303 }
 0x1a5   : > { %v2185_v30 = vld [vmem:[#allocation2 + $0x30] sm:$0xff]  ;;  %v1973_v31 = vpop.f32.mrb[90].mxu1 }
 0x1a6   : > { %v2750_v33 = vpack.c.bf16 %v2308_v26, %v2308_v26  ;;  %v2309_v34 = vmul.f32 %v2274_v16, %v2239_v27  ;;  %2005 = vst.msk [vmem:[#allocation2 + $0x40] sm:$0xff] %vm369_vm1, %v1995_v28  ;;  %v2195_v35 = vadd.f32 %v2185_v30, %v3811_v45  ;;  %v1996_v36 = vadd.f32 %v1986_v32, %v1973_v31  ;;  %v3062_v37 = vpop.f32.mrb[91].mxu1 }
 0x1a8   : > { %v2186_v38 = vld [vmem:[#allocation2 + $0x38] sm:$0xff]  ;;  %v2213_v39 = vld [vmem:[#allocation2 + $0x20] sm:$0xff]  ;;  %2359 = vst.msk [vmem:[%s3306_s28 + $0x8] sm:$0xf] %vm2356_vm8, %v2750_v33  ;;  %v2751_v40 = vpack.c.bf16 %v2309_v34, %v2309_v34 }
 0x1a9   : > { %2205 = vst.msk [vmem:[#allocation2 + $0x30] sm:$0xff] %vm369_vm1, %v2195_v35  ;;  %2006 = vst.msk [vmem:[#allocation2 + $0x48] sm:$0xff] %vm369_vm1, %v1996_v36  ;;  %v2196_v41 = vadd.f32 %v2186_v38, %v3814_v52  ;;  %v2230_v42 = vadd.f32 %v3809_v44, %v2213_v39 }
 0x1aa   : > { %v2214_v43 = vld [vmem:[#allocation2 + $0x28] sm:$0xff]  ;;  %2360 = vst.msk [vmem:[%s3306_s28 + $0xc] sm:$0xf] %vm2356_vm8, %v2751_v40 }
 0x1ab   : > { %2206 = vst.msk [vmem:[#allocation2 + $0x38] sm:$0xff] %vm369_vm1, %v2196_v41  ;;  %v2231_v45 = vadd.f32 %v3809_v44, %v2214_v43  ;;  %v2240_v46 = vmax.f32 %v2230_v42, 0.0 }
 0x1ad   : > { %v2241_v48 = vmax.f32 %v2231_v45, 0.0  ;;  %v2310_v49 = vmul.f32 %v2279_v47, %v2240_v46  ;;  %v2187_v51 = vld [vmem:[#allocation2 + $0x40] sm:$0xff] }
 0x1ae   : > { %v2197_v52 = vadd.f32 %v2187_v51, %v2172_v9 }
 0x1af   : > { %v2311_v53 = vmul.f32 %v2284_v50, %v2241_v48  ;;  %v2752_v54 = vpack.c.bf16 %v2310_v49, %v2310_v49 }
 0x1b0   : > { %v2215_v55 = vld [vmem:[#allocation2 + $0x30] sm:$0xff]  ;;  %v2188_v56 = vld [vmem:[#allocation2 + $0x48] sm:$0xff]  ;;  %2207 = vst.msk [vmem:[#allocation2 + $0x40] sm:$0xff] %vm369_vm1, %v2197_v52 }
 0x1b1   : > { %v2753_v57 = vpack.c.bf16 %v2311_v53, %v2311_v53  ;;  %2361 = vst.msk [vmem:[%s3306_s28 + $0x10] sm:$0xf] %vm2356_vm8, %v2752_v54  ;;  %v2232_v59 = vadd.f32 %v3809_v44, %v2215_v55  ;;  %v2198_v60 = vadd.f32 %v2188_v56, %v2175_v63 }
 0x1b2   : > { %v2216_v61 = vld [vmem:[#allocation2 + $0x38] sm:$0xff] }
 0x1b3   : > { %2362 = vst.msk [vmem:[%s3306_s28 + $0x14] sm:$0xf] %vm2356_vm8, %v2753_v57  ;;  %v2233_v62 = vadd.f32 %v3809_v44, %v2216_v61  ;;  %v2242_v0 = vmax.f32 %v2232_v59, 0.0 }
 0x1b4   : > { %2208 = vst.msk [vmem:[#allocation2 + $0x48] sm:$0xff] %vm369_vm1, %v2198_v60 }
 0x1b5   : > { %v2243_v3 = vmax.f32 %v2233_v62, 0.0  ;;  %v2312_v4 = vmul.f32 %v2289_v2, %v2242_v0 }
 0x1b7   : > { %v2313_v7 = vmul.f32 %v2294_v5, %v2243_v3  ;;  %v2754_v8 = vpack.c.bf16 %v2312_v4, %v2312_v4  ;;  %v2217_v9 = vld [vmem:[#allocation2 + $0x40] sm:$0xff] }
 0x1b8   : > { %v2234_v10 = vadd.f32 %v3809_v44, %v2217_v9 }
 0x1b9   : > { %v2755_v1 = vpack.c.bf16 %v2313_v7, %v2313_v7  ;;  %2363 = vst.msk [vmem:[%s3306_s28 + $0x18] sm:$0xf] %vm2356_vm8, %v2754_v8 }
 0x1ba   : > { %v2244_v13 = vmax.f32 %v2234_v10, 0.0 }
 0x1bb   : > { %v2218_v11 = vld [vmem:[#allocation2 + $0x48] sm:$0xff]  ;;  %2364 = vst.msk [vmem:[%s3306_s28 + $0x1c] sm:$0xf] %vm2356_vm8, %v2755_v1 }
 0x1bc   : > { %v2235_v12 = vadd.f32 %v3809_v44, %v2218_v11  ;;  %v2314_v17 = vmul.f32 %v2299_v14, %v2244_v13 }
 0x1be   : > { %v2245_v15 = vmax.f32 %v2235_v12, 0.0  ;;  %v2756_v18 = vpack.c.bf16 %v2314_v17, %v2314_v17 }
 0x1c0   : > { %v2315_v63 = vmul.f32 %v2304_v58, %v2245_v15  ;;  %2365 = vst.msk [vmem:[%s3306_s28 + $0x20] sm:$0xf] %vm2356_vm8, %v2756_v18 }
 0x1c2   : > { %v2757_v19 = vpack.c.bf16 %v2315_v63, %v2315_v63 }
 0x1c4   : > { %2366 = vst.msk [vmem:[%s3306_s28 + $0x24] sm:$0xf] %vm2356_vm8, %v2757_v19 }
 0x1c5 PF: > { %2369 = sbr.rel (!%p3294_p7) target bundleno = 460 (0x1cc), region = 44  ;;  %vm2370_vm9 = vcmask (%p3294_p7), 519168   ;;  %v3245_v44 = vmov (%p3294_p7), 0  }
 0x1c6   : > { %2371 = vst.msk [vmem:[%s3306_s28] sm:$0xf] (%p3294_p7), %vm2370_vm9, %v3245_v44  ;;  %2372 = vst.msk [vmem:[%s3306_s28 + $0x4] sm:$0xf] (%p3294_p7), %vm2370_vm9, %v3245_v44 }
 0x1c7   : > { %2373 = vst.msk [vmem:[%s3306_s28 + $0x8] sm:$0xf] (%p3294_p7), %vm2370_vm9, %v3245_v44  ;;  %2374 = vst.msk [vmem:[%s3306_s28 + $0xc] sm:$0xf] (%p3294_p7), %vm2370_vm9, %v3245_v44 }
 0x1c8   : > { %2375 = vst.msk [vmem:[%s3306_s28 + $0x10] sm:$0xf] (%p3294_p7), %vm2370_vm9, %v3245_v44  ;;  %2376 = vst.msk [vmem:[%s3306_s28 + $0x14] sm:$0xf] (%p3294_p7), %vm2370_vm9, %v3245_v44 }
 0x1c9   : > { %2377 = vst.msk [vmem:[%s3306_s28 + $0x18] sm:$0xf] (%p3294_p7), %vm2370_vm9, %v3245_v44  ;;  %2378 = vst.msk [vmem:[%s3306_s28 + $0x1c] sm:$0xf] (%p3294_p7), %vm2370_vm9, %v3245_v44 }
 0x1ca   : > { %2379 = vst.msk [vmem:[%s3306_s28 + $0x20] sm:$0xf] (%p3294_p7), %vm2370_vm9, %v3245_v44  ;;  %2380 = vst.msk [vmem:[%s3306_s28 + $0x24] sm:$0xf] (%p3294_p7), %vm2370_vm9, %v3245_v44 }
 0x1cc PF: > { %s14_s17 = sadd.s32 1, %s3240_s17   ;;  %s3888_s15 = smov %s3236_s16 }
 0x1cd   : > { %p11_p8 = scmp.ge.s32.totalorder %s14_s17, 5   ;;  %s3889_s16 = smov %s3891_s18 }
 0x1cf   :  { %13 = sbr.rel (!%p11_p8) target bundleno = 2 (0x2), region = 94 }

</bundles_post_ra>
